<compile_context>
chip_gen: v6e
topology: v6e:2x2x1
jax: 0.10.0
libtpu: 0.0.40
codegen_flags: <defaults>
</compile_context>

<pallas_src>
import functools
import math

import jax
import jax.numpy as jnp
from jax import lax
from jax.experimental import pallas as pl
from jax.experimental.pallas import tpu as pltpu

LN_EPS = 1e-5
_INV_SQRT2 = 1.0 / math.sqrt(2.0)
_TB_CAP = 2048                      # rows per grid step (amortize ~0.35us/step)
_VMEM_LIMIT = 64 * 1024 * 1024      # above v5e's 16 MiB default; << any physical VMEM


def _round_up(n, m):
    return -(-n // m) * m


# ---------------------------------------------------------------------------
# In-kernel math helpers
# ---------------------------------------------------------------------------
def _erf_poly(x):
    """erf via Abramowitz & Stegun 7.1.26 (max abs err ~1.6e-7).

    Uses only mul/add/div/exp/select so it does not rely on a native erf
    lowering; exp goes to the EUP slot, the rest to the VPU — neither is the
    binding unit of this MXU-bound kernel.
    """
    a1, a2, a3, a4, a5 = (0.254829592, -0.284496736, 1.421413741,
                          -1.453152027, 1.061405429)
    ax = jnp.abs(x)
    t = 1.0 / (1.0 + 0.3275911 * ax)
    poly = ((((a5 * t + a4) * t + a3) * t + a2) * t + a1) * t
    y = 1.0 - poly * jnp.exp(-ax * ax)
    return jnp.where(x < 0.0, -y, y)


def _gelu2(x):
    """2 * GELU_exact(x); the factor 0.5 is folded into w2b/w4b on the host."""
    return x * (1.0 + _erf_poly(x * _INV_SQRT2))


def _ln_stats(z, a_ref):
    """(mean, E[z^2]) over the normalized axis via the constant averaging
    matrix; fused into ONE f32 MXU matmul (LHS stacked along M) when the tile
    is sublane-aligned."""
    tb = z.shape[0]
    if tb % 8 == 0:
        r = jnp.dot(jnp.concatenate([z, z * z], axis=0), a_ref[...],
                    preferred_element_type=jnp.float32)
        return r[:tb], r[tb:]
    mean = jnp.dot(z, a_ref[...], preferred_element_type=jnp.float32)
    ez2 = jnp.dot(z * z, a_ref[...], preferred_element_type=jnp.float32)
    return mean, ez2


# ---------------------------------------------------------------------------
# Kernel: one (TB, L) slab, pure 2-D lane-dense matmuls + VPU elementwise.
# ---------------------------------------------------------------------------
def _tsmixer_kernel(x_ref, ap_ref, at_ref, w1_ref, b1_ref, w2_ref, b2_ref,
                    w3_ref, b3_ref, w4_ref, b4_ref, o_ref):

    def mm(lhs, w_ref):
        # Mixing matmuls run in the weights' dtype (bf16 by default => native
        # MXU rate); accumulation stays f32.
        return jnp.dot(lhs.astype(w_ref.dtype), w_ref[...],
                       preferred_element_type=jnp.float32)

    x = x_ref[...]                                       # (TB, L) f32

    # ---- patch mixing: LN over patches -> Linear(P,H1) -> GELU -> Linear(H1,P)
    mean, ex2 = _ln_stats(x, ap_ref)                     # f32 stat matmul(s)
    var = jnp.maximum(ex2 - mean * mean, 0.0)            # guard cancellation
    u = (x - mean) * lax.rsqrt(var + LN_EPS)             # LN affine folded into w1b/b1b
    a = _gelu2(mm(u, w1_ref) + b1_ref[...])              # (TB, S*H1)
    y = x + mm(a, w2_ref) + b2_ref[...]                  # (TB, L) residual

    # ---- time mixing: LN over time -> Linear(S,H2) -> GELU -> Linear(H2,S)
    mean2, ey2 = _ln_stats(y, at_ref)
    var2 = jnp.maximum(ey2 - mean2 * mean2, 0.0)
    v = (y - mean2) * lax.rsqrt(var2 + LN_EPS)
    t = _gelu2(mm(v, w3_ref) + b3_ref[...])              # (TB, P*H2)
    o_ref[...] = y + mm(t, w4_ref) + b4_ref[...]         # lane-dense store


# ---------------------------------------------------------------------------
# Host-side parameter preparation (done once per model, outside the kernel)
# ---------------------------------------------------------------------------
def prepare_params(params, num_patches, patch_size, matmul_dtype=jnp.bfloat16):
    """Fold all transposes, the LN affines and the GELU 0.5 into
    block-structured weights. Flat layout: column c = p*patch_size + s."""
    g1, bt1, w1, b1, w2, b2, g2, bt2, w3, b3, w4, b4 = params
    P, S = num_patches, patch_size
    H1, H2 = w1.shape[1], w3.shape[1]
    L = P * S
    f32 = jnp.float32
    hp = lax.Precision.HIGHEST
    eye_s = jnp.eye(S, dtype=f32)
    eye_p = jnp.eye(P, dtype=f32)

    # Averaging matrices for the two LayerNorms' mean / E[x^2] matmuls (f32).
    a_patch = jnp.kron(jnp.ones((P, P), f32) / P, eye_s)      # mean over p
    a_time = jnp.kron(eye_p, jnp.ones((S, S), f32) / S)       # mean over s

    # LayerNorm affine params in the flat layout.
    g1b = jnp.repeat(g1.reshape(-1).astype(f32), S)           # gamma1[p] at col p*S+s
    bt1b = jnp.repeat(bt1.reshape(-1).astype(f32), S)
    g2b = jnp.tile(g2.reshape(-1).astype(f32), P)             # gamma2[s] at col p*S+s
    bt2b = jnp.tile(bt2.reshape(-1).astype(f32), P)

    # Patch mixing: contract over p for every s (block-diagonal in s).
    w1b = jnp.einsum('ph,st->psth', w1.astype(f32), eye_s).reshape(L, S * H1)
    b1b = jnp.tile(b1.reshape(-1).astype(f32), S).reshape(1, S * H1)
    w2b = jnp.einsum('hp,st->shpt', w2.astype(f32), eye_s).reshape(S * H1, L)
    b2b = jnp.repeat(b2.reshape(-1).astype(f32), S).reshape(1, L)

    # Time mixing: contract over s for every p (block-diagonal in p).
    w3b = jnp.einsum('sh,pq->psqh', w3.astype(f32), eye_p).reshape(L, P * H2)
    b3b = jnp.tile(b3.reshape(-1).astype(f32), P).reshape(1, P * H2)
    w4b = jnp.einsum('hs,pq->phqs', w4.astype(f32), eye_p).reshape(P * H2, L)
    b4b = jnp.tile(b4.reshape(-1).astype(f32), P).reshape(1, L)

    # Fold each LayerNorm affine into the first mixing matmul:
    #   (u*g + bt) @ W + b  ==  u @ (diag(g) @ W) + (bt @ W + b)
    b1b = b1b + jnp.dot(bt1b.reshape(1, L), w1b, precision=hp)
    w1b = g1b.reshape(L, 1) * w1b
    b3b = b3b + jnp.dot(bt2b.reshape(1, L), w3b, precision=hp)
    w3b = g2b.reshape(L, 1) * w3b

    # Fold GELU's 0.5 into the second mixing matmul of each block; the kernel
    # computes 2*GELU(pre) = pre*(1+erf(pre/sqrt(2))).
    w2b = 0.5 * w2b
    w4b = 0.5 * w4b

    w1b, w2b, w3b, w4b = (w.astype(matmul_dtype) for w in (w1b, w2b, w3b, w4b))
    return (a_patch, a_time, w1b, b1b, w2b, b2b, w3b, b3b, w4b, b4b)


# ---------------------------------------------------------------------------
# Forward pass
# ---------------------------------------------------------------------------
def _choose_batch_tile(batch, min_grid_steps):
    """Rows per grid step. Single step when the whole batch fits the cap
    (v5e/v6e: 1 TC); pass min_grid_steps=2 on v7x so the parallel batch axis
    can be sharded across its two TensorCores."""
    if min_grid_steps <= 1 and batch <= _TB_CAP:
        return batch                       # block == full batch dim (no padding)
    tb = -(-batch // max(min_grid_steps, 1))
    tb = min(_TB_CAP, _round_up(tb, 8))
    return batch if tb >= batch else tb


def _tsmixer_pallas(x, big, *, min_grid_steps, batch_tile):
    x = x.astype(jnp.float32)
    B, L = x.shape
    (a_patch, a_time, w1b, b1b, w2b, b2b, w3b, b3b, w4b, b4b) = big

    if batch_tile is None:
        tb = _choose_batch_tile(B, min_grid_steps)
    else:
        tb = min(int(batch_tile), B)
    if tb < B:                              # tiles smaller than the array must be 8-aligned
        tb = min(_round_up(tb, 8), B)
    steps = pl.cdiv(B, tb)                  # ragged last block: OOB rows never stored

    def const_spec(arr):
        # Constant-index weight/bias blocks (tiny; default-buffered — see TODO above).
        return pl.BlockSpec(arr.shape, lambda b: (0, 0))

    in_specs = [pl.BlockSpec((tb, L), lambda b: (b, 0))]
    in_specs += [const_spec(a) for a in big]

    return pl.pallas_call(
        _tsmixer_kernel,
        out_shape=jax.ShapeDtypeStruct((B, L), jnp.float32),
        grid_spec=pltpu.PrefetchScalarGridSpec(
            num_scalar_prefetch=0,
            grid=(steps,),
            in_specs=in_specs,
            out_specs=pl.BlockSpec((tb, L), lambda b: (b, 0)),
        ),
        compiler_params=pltpu.CompilerParams(
            dimension_semantics=("parallel",),
            vmem_limit_bytes=_VMEM_LIMIT,
        ),
    )(x, *big)


def make_tsmixer(params, num_patches, patch_size, *,
                 matmul_dtype=jnp.bfloat16, min_grid_steps=1, batch_tile=None):
    """Build the block-structured weights ONCE and return a jitted forward.

    matmul_dtype: operand dtype of the four mixing matmuls (bf16 default =
      native MXU rate; LN-stat matmuls and all accumulation stay f32).
    min_grid_steps: 2 on v7x (megacore), 1 on single-TC v5e/v6e.
    batch_tile: explicit rows-per-step override (mainly for testing).
    """
    big = prepare_params(params, num_patches, patch_size, matmul_dtype)
    fwd = jax.jit(functools.partial(_tsmixer_pallas,
                                    min_grid_steps=min_grid_steps,
                                    batch_tile=batch_tile))
    return lambda x: fwd(x, big)


# ---------------------------------------------------------------------------
# Pure-JAX references (validation only)
# ---------------------------------------------------------------------------
def _gelu_exact(x):
    return 0.5 * x * (1.0 + lax.erf(x * _INV_SQRT2))


def _layernorm(x, gamma, beta):
    mean = jnp.mean(x, axis=-1, keepdims=True)
    var = jnp.mean((x - mean) ** 2, axis=-1, keepdims=True)
    return (x - mean) * lax.rsqrt(var + LN_EPS) * gamma + beta


def tsmixer_reference(x, params, num_patches, patch_size):
    """Faithful port of the PyTorch forward (full-precision matmuls)."""
    g1, bt1, w1, b1, w2, b2, g2, bt2, w3, b3, w4, b4 = params
    B, _ = x.shape
    hp = lax.Precision.HIGHEST
    x3 = x.reshape(B, num_patches, patch_size)

    xt = jnp.swapaxes(x3, 1, 2)                                   # (B, S, P)
    h = _layernorm(xt, g1.reshape(-1), bt1.reshape(-1))
    h = jnp.dot(_gelu_exact(jnp.dot(h, w1, precision=hp) + b1.reshape(-1)),
                w2, precision=hp) + b2.reshape(-1)
    y = x3 + jnp.swapaxes(h, 1, 2)

    t = _layernorm(y, g2.reshape(-1), bt2.reshape(-1))
    t = jnp.dot(_gelu_exact(jnp.dot(t, w3, precision=hp) + b3.reshape(-1)),
                w4, precision=hp) + b4.reshape(-1)
    return (y + t).reshape(B, num_patches * patch_size)


def tsmixer_flat_reference(x, big_f32):
    """Exactly the kernel's math (flat layout, folded weights) in plain JAX at
    full precision — validates the block-diagonal construction + folds."""
    (a_patch, a_time, w1b, b1b, w2b, b2b, w3b, b3b, w4b, b4b) = big_f32
    hp = lax.Precision.HIGHEST
    dot = lambda a, b: jnp.dot(a, b, precision=hp)
    n = x.shape[0]

    mean, ex2 = dot(x, a_patch), dot(x * x, a_patch)
    u = (x - mean) * lax.rsqrt(jnp.maximum(ex2 - mean * mean, 0.0) + LN_EPS)
    h = dot(u, w1b) + b1b
    a = h * (1.0 + lax.erf(h * _INV_SQRT2))
    y = x + dot(a, w2b) + b2b

    mean2, ey2 = dot(y, a_time), dot(y * y, a_time)
    v = (y - mean2) * lax.rsqrt(jnp.maximum(ey2 - mean2 * mean2, 0.0) + LN_EPS)
    h2 = dot(v, w3b) + b3b
    t = h2 * (1.0 + lax.erf(h2 * _INV_SQRT2))
    return y + dot(t, w4b) + b4b


def init_params(key, num_patches, patch_size, patch_hidden_dim, time_hidden_dim):
    """PyTorch-style init (LN: ones/zeros, Linear: U(-1/sqrt(in), 1/sqrt(in)))."""
    ks = jax.random.split(key, 8)

    def linear(kw, kb, fan_in, fan_out):
        bound = 1.0 / math.sqrt(fan_in)
        w = jax.random.uniform(kw, (fan_in, fan_out), jnp.float32, -bound, bound)
        b = jax.random.uniform(kb, (1, fan_out), jnp.float32, -bound, bound)
        return w, b

    g1 = jnp.ones((1, num_patches), jnp.float32)
    bt1 = jnp.zeros((1, num_patches), jnp.float32)
    w1, b1 = linear(ks[0], ks[1], num_patches, patch_hidden_dim)
    w2, b2 = linear(ks[2], ks[3], patch_hidden_dim, num_patches)

    g2 = jnp.ones((1, patch_size), jnp.float32)
    bt2 = jnp.zeros((1, patch_size), jnp.float32)
    w3, b3 = linear(ks[4], ks[5], patch_size, time_hidden_dim)
    w4, b4 = linear(ks[6], ks[7], time_hidden_dim, patch_size)

    return (g1, bt1, w1, b1, w2, b2, g2, bt2, w3, b3, w4, b4)


if __name__ == "__main__":
    num_patches = 8
    patch_size = 16
    patch_hidden_dim = 32
    time_hidden_dim = 32
    context_length = num_patches * patch_size          # 128 -> lane-dense I/O

    key = jax.random.PRNGKey(0)
    kx, kp, kx2 = jax.random.split(key, 3)
    params = init_params(kp, num_patches, patch_size,
                         patch_hidden_dim, time_hidden_dim)

    # --- small case (batch=2) ----------------------------------------------
    x = jax.random.normal(kx, (2, context_length), jnp.float32)
    ref = tsmixer_reference(x, params, num_patches, patch_size)

    # Host-side check of the block-diagonal weights + affine/GELU folds.
    big_f32 = prepare_params(params, num_patches, patch_size, jnp.float32)
    flat = tsmixer_flat_reference(x, big_f32)
    assert jnp.allclose(flat, ref, rtol=1e-4, atol=1e-4), \
        "flat (block-diagonal, folded) formulation mismatch"

    # f32-operand kernel path (structural check, tight-ish tolerance).
    fwd_f32 = make_tsmixer(params, num_patches, patch_size,
                           matmul_dtype=jnp.float32)
    out_f32 = jax.block_until_ready(fwd_f32(x))
    assert out_f32.shape == (2, context_length)
    assert jnp.allclose(out_f32, ref, rtol=3e-2, atol=3e-2), \
        "Pallas f32 kernel mismatch vs reference"

    # Default bf16-operand path (f32 accumulation; ~1e-3 abs error band).
    fwd = make_tsmixer(params, num_patches, patch_size)
    out = jax.block_until_ready(fwd(x))
    assert jnp.allclose(out, ref, rtol=5e-2, atol=5e-2), \
        "Pallas bf16 kernel mismatch vs reference"

    # Batched case: single grid step, no padding / slicing.
    xb = jax.random.normal(kx2, (100, context_length), jnp.float32)
    refb = tsmixer_reference(xb, params, num_patches, patch_size)
    outb = jax.block_until_ready(fwd(xb))
    assert outb.shape == (100, context_length)
    assert jnp.allclose(outb, refb, rtol=5e-2, atol=5e-2), \
        "Pallas bf16 kernel mismatch vs reference (batched, single step)"

    # Multi-step parallel grid with a ragged last block (exercises the path
    # used for B > the tile cap and for v7x min_grid_steps=2).
    fwd_tiled = make_tsmixer(params, num_patches, patch_size, batch_tile=64)
    outt = jax.block_until_ready(fwd_tiled(xb))
    assert jnp.allclose(outt, refb, rtol=5e-2, atol=5e-2), \
        "Pallas bf16 kernel mismatch vs reference (ragged multi-step grid)"

    print("KERNEL_OK")
</pallas_src>

<mosaic_0001>
module attributes {stable_mosaic.version = 11 : i64} {
  func.func @_tsmixer_kernel(%arg0: i32, %arg1: memref<2x128xf32, #tpu.memory_space<vmem>>, %arg2: memref<128x128xf32, #tpu.memory_space<vmem>>, %arg3: memref<128x128xf32, #tpu.memory_space<vmem>>, %arg4: memref<128x512xf32, #tpu.memory_space<vmem>>, %arg5: memref<1x512xf32, #tpu.memory_space<vmem>>, %arg6: memref<512x128xf32, #tpu.memory_space<vmem>>, %arg7: memref<1x128xf32, #tpu.memory_space<vmem>>, %arg8: memref<128x256xf32, #tpu.memory_space<vmem>>, %arg9: memref<1x256xf32, #tpu.memory_space<vmem>>, %arg10: memref<256x128xf32, #tpu.memory_space<vmem>>, %arg11: memref<1x128xf32, #tpu.memory_space<vmem>>, %arg12: memref<2x128xf32, #tpu.memory_space<vmem>>) attributes {dimension_semantics = [#tpu.dimension_semantics<parallel>], iteration_bounds = array<i64: 1>, scalar_prefetch = 0 : i64, scratch_operands = 0 : i64, tpu.core_type = #tpu.core_type<tc>, window_params = [{transform_indices = @transform_0, window_bounds = array<i64: 2, 128>}, {pipeline_mode = #tpu.pipeline_mode<synchronous>, transform_indices = @transform_1, window_bounds = array<i64: 128, 128>}, {pipeline_mode = #tpu.pipeline_mode<synchronous>, transform_indices = @transform_2, window_bounds = array<i64: 128, 128>}, {pipeline_mode = #tpu.pipeline_mode<synchronous>, transform_indices = @transform_3, window_bounds = array<i64: 128, 512>}, {pipeline_mode = #tpu.pipeline_mode<synchronous>, transform_indices = @transform_4, window_bounds = array<i64: 1, 512>}, {pipeline_mode = #tpu.pipeline_mode<synchronous>, transform_indices = @transform_5, window_bounds = array<i64: 512, 128>}, {pipeline_mode = #tpu.pipeline_mode<synchronous>, transform_indices = @transform_6, window_bounds = array<i64: 1, 128>}, {pipeline_mode = #tpu.pipeline_mode<synchronous>, transform_indices = @transform_7, window_bounds = array<i64: 128, 256>}, {pipeline_mode = #tpu.pipeline_mode<synchronous>, transform_indices = @transform_8, window_bounds = array<i64: 1, 256>}, {pipeline_mode = #tpu.pipeline_mode<synchronous>, transform_indices = @transform_9, window_bounds = array<i64: 256, 128>}, {pipeline_mode = #tpu.pipeline_mode<synchronous>, transform_indices = @transform_10, window_bounds = array<i64: 1, 128>}, {transform_indices = @transform_11, window_bounds = array<i64: 2, 128>}]} {
    %c0 = arith.constant 0 : index
    %c0_0 = arith.constant 0 : index
    %0 = vector.load %arg1[%c0, %c0_0] : memref<2x128xf32, #tpu.memory_space<vmem>>, vector<2x128xf32>
    %c0_1 = arith.constant 0 : index
    %c0_2 = arith.constant 0 : index
    %1 = vector.load %arg2[%c0_1, %c0_2] : memref<128x128xf32, #tpu.memory_space<vmem>>, vector<128x128xf32>
    %cst = arith.constant dense<0.000000e+00> : vector<2x128xf32>
    %2 = tpu.matmul %0, %1, %cst {dimension_numbers = #tpu.dot_dimension_numbers<[1], [0], [0], [1], [0, 0, 1, 1], [], []>} : vector<2x128xf32>, vector<128x128xf32>, vector<2x128xf32> -> vector<2x128xf32>
    %3 = arith.mulf %0, %0 : vector<2x128xf32>
    %c0_3 = arith.constant 0 : index
    %c0_4 = arith.constant 0 : index
    %4 = vector.load %arg2[%c0_3, %c0_4] : memref<128x128xf32, #tpu.memory_space<vmem>>, vector<128x128xf32>
    %cst_5 = arith.constant dense<0.000000e+00> : vector<2x128xf32>
    %5 = tpu.matmul %3, %4, %cst_5 {dimension_numbers = #tpu.dot_dimension_numbers<[1], [0], [0], [1], [0, 0, 1, 1], [], []>} : vector<2x128xf32>, vector<128x128xf32>, vector<2x128xf32> -> vector<2x128xf32>
    %6 = arith.mulf %2, %2 : vector<2x128xf32>
    %7 = arith.subf %5, %6 : vector<2x128xf32>
    %cst_6 = arith.constant 0.000000e+00 : f32
    %8 = vector.broadcast %cst_6 : f32 to vector<2x128xf32>
    %9 = arith.maximumf %7, %8 : vector<2x128xf32>
    %10 = arith.subf %0, %2 : vector<2x128xf32>
    %cst_7 = arith.constant 9.99999974E-6 : f32
    %11 = vector.broadcast %cst_7 : f32 to vector<2x128xf32>
    %12 = arith.addf %9, %11 : vector<2x128xf32>
    %13 = math.rsqrt %12 : vector<2x128xf32>
    %14 = arith.mulf %10, %13 : vector<2x128xf32>
    %c0_8 = arith.constant 0 : index
    %c0_9 = arith.constant 0 : index
    %15 = vector.load %arg4[%c0_8, %c0_9] : memref<128x512xf32, #tpu.memory_space<vmem>>, vector<128x512xf32>
    %cst_10 = arith.constant dense<0.000000e+00> : vector<2x512xf32>
    %16 = tpu.matmul %14, %15, %cst_10 {dimension_numbers = #tpu.dot_dimension_numbers<[1], [0], [0], [1], [0, 0, 1, 1], [], []>} : vector<2x128xf32>, vector<128x512xf32>, vector<2x512xf32> -> vector<2x512xf32>
    %c0_11 = arith.constant 0 : index
    %c0_12 = arith.constant 0 : index
    %17 = vector.load %arg5[%c0_11, %c0_12] : memref<1x512xf32, #tpu.memory_space<vmem>>, vector<1x512xf32>
    %18 = vector.broadcast %17 : vector<1x512xf32> to vector<2x512xf32>
    %19 = arith.addf %16, %18 : vector<2x512xf32>
    %cst_13 = arith.constant 0.707106769 : f32
    %20 = vector.broadcast %cst_13 : f32 to vector<2x512xf32>
    %21 = arith.mulf %19, %20 : vector<2x512xf32>
    %22 = math.absf %21 : vector<2x512xf32>
    %cst_14 = arith.constant 0.327591091 : f32
    %23 = vector.broadcast %cst_14 : f32 to vector<2x512xf32>
    %24 = arith.mulf %23, %22 : vector<2x512xf32>
    %cst_15 = arith.constant 1.000000e+00 : f32
    %25 = vector.broadcast %cst_15 : f32 to vector<2x512xf32>
    %26 = arith.addf %25, %24 : vector<2x512xf32>
    %cst_16 = arith.constant 1.000000e+00 : f32
    %27 = vector.broadcast %cst_16 : f32 to vector<2x512xf32>
    %28 = arith.divf %27, %26 : vector<2x512xf32>
    %cst_17 = arith.constant 1.06140542 : f32
    %29 = vector.broadcast %cst_17 : f32 to vector<2x512xf32>
    %30 = arith.mulf %29, %28 : vector<2x512xf32>
    %cst_18 = arith.constant -1.45315206 : f32
    %31 = vector.broadcast %cst_18 : f32 to vector<2x512xf32>
    %32 = arith.addf %30, %31 : vector<2x512xf32>
    %33 = arith.mulf %32, %28 : vector<2x512xf32>
    %cst_19 = arith.constant 1.42141378 : f32
    %34 = vector.broadcast %cst_19 : f32 to vector<2x512xf32>
    %35 = arith.addf %33, %34 : vector<2x512xf32>
    %36 = arith.mulf %35, %28 : vector<2x512xf32>
    %cst_20 = arith.constant -0.284496725 : f32
    %37 = vector.broadcast %cst_20 : f32 to vector<2x512xf32>
    %38 = arith.addf %36, %37 : vector<2x512xf32>
    %39 = arith.mulf %38, %28 : vector<2x512xf32>
    %cst_21 = arith.constant 0.254829586 : f32
    %40 = vector.broadcast %cst_21 : f32 to vector<2x512xf32>
    %41 = arith.addf %39, %40 : vector<2x512xf32>
    %42 = arith.mulf %41, %28 : vector<2x512xf32>
    %cst_22 = arith.constant 0.000000e+00 : f32
    %43 = vector.broadcast %cst_22 : f32 to vector<2x512xf32>
    %44 = arith.subf %43, %22 : vector<2x512xf32>
    %45 = arith.mulf %44, %22 : vector<2x512xf32>
    %46 = math.exp %45 : vector<2x512xf32>
    %47 = arith.mulf %42, %46 : vector<2x512xf32>
    %cst_23 = arith.constant 1.000000e+00 : f32
    %48 = vector.broadcast %cst_23 : f32 to vector<2x512xf32>
    %49 = arith.subf %48, %47 : vector<2x512xf32>
    %cst_24 = arith.constant 0.000000e+00 : f32
    %50 = vector.broadcast %cst_24 : f32 to vector<2x512xf32>
    %51 = arith.cmpf olt, %21, %50 : vector<2x512xf32>
    %cst_25 = arith.constant 0.000000e+00 : f32
    %52 = vector.broadcast %cst_25 : f32 to vector<2x512xf32>
    %53 = arith.subf %52, %49 : vector<2x512xf32>
    %54 = arith.select %51, %53, %49 : vector<2x512xi1>, vector<2x512xf32>
    %cst_26 = arith.constant 1.000000e+00 : f32
    %55 = vector.broadcast %cst_26 : f32 to vector<2x512xf32>
    %56 = arith.addf %55, %54 : vector<2x512xf32>
    %57 = arith.mulf %19, %56 : vector<2x512xf32>
    %c0_27 = arith.constant 0 : index
    %c0_28 = arith.constant 0 : index
    %58 = vector.load %arg6[%c0_27, %c0_28] : memref<512x128xf32, #tpu.memory_space<vmem>>, vector<512x128xf32>
    %cst_29 = arith.constant dense<0.000000e+00> : vector<2x128xf32>
    %59 = tpu.matmul %57, %58, %cst_29 {dimension_numbers = #tpu.dot_dimension_numbers<[1], [0], [0], [1], [0, 0, 1, 1], [], []>} : vector<2x512xf32>, vector<512x128xf32>, vector<2x128xf32> -> vector<2x128xf32>
    %60 = arith.addf %0, %59 : vector<2x128xf32>
    %c0_30 = arith.constant 0 : index
    %c0_31 = arith.constant 0 : index
    %61 = vector.load %arg7[%c0_30, %c0_31] : memref<1x128xf32, #tpu.memory_space<vmem>>, vector<1x128xf32>
    %62 = vector.broadcast %61 : vector<1x128xf32> to vector<2x128xf32>
    %63 = arith.addf %60, %62 : vector<2x128xf32>
    %c0_32 = arith.constant 0 : index
    %c0_33 = arith.constant 0 : index
    %64 = vector.load %arg3[%c0_32, %c0_33] : memref<128x128xf32, #tpu.memory_space<vmem>>, vector<128x128xf32>
    %cst_34 = arith.constant dense<0.000000e+00> : vector<2x128xf32>
    %65 = tpu.matmul %63, %64, %cst_34 {dimension_numbers = #tpu.dot_dimension_numbers<[1], [0], [0], [1], [0, 0, 1, 1], [], []>} : vector<2x128xf32>, vector<128x128xf32>, vector<2x128xf32> -> vector<2x128xf32>
    %66 = arith.mulf %63, %63 : vector<2x128xf32>
    %c0_35 = arith.constant 0 : index
    %c0_36 = arith.constant 0 : index
    %67 = vector.load %arg3[%c0_35, %c0_36] : memref<128x128xf32, #tpu.memory_space<vmem>>, vector<128x128xf32>
    %cst_37 = arith.constant dense<0.000000e+00> : vector<2x128xf32>
    %68 = tpu.matmul %66, %67, %cst_37 {dimension_numbers = #tpu.dot_dimension_numbers<[1], [0], [0], [1], [0, 0, 1, 1], [], []>} : vector<2x128xf32>, vector<128x128xf32>, vector<2x128xf32> -> vector<2x128xf32>
    %69 = arith.mulf %65, %65 : vector<2x128xf32>
    %70 = arith.subf %68, %69 : vector<2x128xf32>
    %cst_38 = arith.constant 0.000000e+00 : f32
    %71 = vector.broadcast %cst_38 : f32 to vector<2x128xf32>
    %72 = arith.maximumf %70, %71 : vector<2x128xf32>
    %73 = arith.subf %63, %65 : vector<2x128xf32>
    %cst_39 = arith.constant 9.99999974E-6 : f32
    %74 = vector.broadcast %cst_39 : f32 to vector<2x128xf32>
    %75 = arith.addf %72, %74 : vector<2x128xf32>
    %76 = math.rsqrt %75 : vector<2x128xf32>
    %77 = arith.mulf %73, %76 : vector<2x128xf32>
    %c0_40 = arith.constant 0 : index
    %c0_41 = arith.constant 0 : index
    %78 = vector.load %arg8[%c0_40, %c0_41] : memref<128x256xf32, #tpu.memory_space<vmem>>, vector<128x256xf32>
    %cst_42 = arith.constant dense<0.000000e+00> : vector<2x256xf32>
    %79 = tpu.matmul %77, %78, %cst_42 {dimension_numbers = #tpu.dot_dimension_numbers<[1], [0], [0], [1], [0, 0, 1, 1], [], []>} : vector<2x128xf32>, vector<128x256xf32>, vector<2x256xf32> -> vector<2x256xf32>
    %c0_43 = arith.constant 0 : index
    %c0_44 = arith.constant 0 : index
    %80 = vector.load %arg9[%c0_43, %c0_44] : memref<1x256xf32, #tpu.memory_space<vmem>>, vector<1x256xf32>
    %81 = vector.broadcast %80 : vector<1x256xf32> to vector<2x256xf32>
    %82 = arith.addf %79, %81 : vector<2x256xf32>
    %cst_45 = arith.constant 0.707106769 : f32
    %83 = vector.broadcast %cst_45 : f32 to vector<2x256xf32>
    %84 = arith.mulf %82, %83 : vector<2x256xf32>
    %85 = math.absf %84 : vector<2x256xf32>
    %cst_46 = arith.constant 0.327591091 : f32
    %86 = vector.broadcast %cst_46 : f32 to vector<2x256xf32>
    %87 = arith.mulf %86, %85 : vector<2x256xf32>
    %cst_47 = arith.constant 1.000000e+00 : f32
    %88 = vector.broadcast %cst_47 : f32 to vector<2x256xf32>
    %89 = arith.addf %88, %87 : vector<2x256xf32>
    %cst_48 = arith.constant 1.000000e+00 : f32
    %90 = vector.broadcast %cst_48 : f32 to vector<2x256xf32>
    %91 = arith.divf %90, %89 : vector<2x256xf32>
    %cst_49 = arith.constant 1.06140542 : f32
    %92 = vector.broadcast %cst_49 : f32 to vector<2x256xf32>
    %93 = arith.mulf %92, %91 : vector<2x256xf32>
    %cst_50 = arith.constant -1.45315206 : f32
    %94 = vector.broadcast %cst_50 : f32 to vector<2x256xf32>
    %95 = arith.addf %93, %94 : vector<2x256xf32>
    %96 = arith.mulf %95, %91 : vector<2x256xf32>
    %cst_51 = arith.constant 1.42141378 : f32
    %97 = vector.broadcast %cst_51 : f32 to vector<2x256xf32>
    %98 = arith.addf %96, %97 : vector<2x256xf32>
    %99 = arith.mulf %98, %91 : vector<2x256xf32>
    %cst_52 = arith.constant -0.284496725 : f32
    %100 = vector.broadcast %cst_52 : f32 to vector<2x256xf32>
    %101 = arith.addf %99, %100 : vector<2x256xf32>
    %102 = arith.mulf %101, %91 : vector<2x256xf32>
    %cst_53 = arith.constant 0.254829586 : f32
    %103 = vector.broadcast %cst_53 : f32 to vector<2x256xf32>
    %104 = arith.addf %102, %103 : vector<2x256xf32>
    %105 = arith.mulf %104, %91 : vector<2x256xf32>
    %cst_54 = arith.constant 0.000000e+00 : f32
    %106 = vector.broadcast %cst_54 : f32 to vector<2x256xf32>
    %107 = arith.subf %106, %85 : vector<2x256xf32>
    %108 = arith.mulf %107, %85 : vector<2x256xf32>
    %109 = math.exp %108 : vector<2x256xf32>
    %110 = arith.mulf %105, %109 : vector<2x256xf32>
    %cst_55 = arith.constant 1.000000e+00 : f32
    %111 = vector.broadcast %cst_55 : f32 to vector<2x256xf32>
    %112 = arith.subf %111, %110 : vector<2x256xf32>
    %cst_56 = arith.constant 0.000000e+00 : f32
    %113 = vector.broadcast %cst_56 : f32 to vector<2x256xf32>
    %114 = arith.cmpf olt, %84, %113 : vector<2x256xf32>
    %cst_57 = arith.constant 0.000000e+00 : f32
    %115 = vector.broadcast %cst_57 : f32 to vector<2x256xf32>
    %116 = arith.subf %115, %112 : vector<2x256xf32>
    %117 = arith.select %114, %116, %112 : vector<2x256xi1>, vector<2x256xf32>
    %cst_58 = arith.constant 1.000000e+00 : f32
    %118 = vector.broadcast %cst_58 : f32 to vector<2x256xf32>
    %119 = arith.addf %118, %117 : vector<2x256xf32>
    %120 = arith.mulf %82, %119 : vector<2x256xf32>
    %c0_59 = arith.constant 0 : index
    %c0_60 = arith.constant 0 : index
    %121 = vector.load %arg10[%c0_59, %c0_60] : memref<256x128xf32, #tpu.memory_space<vmem>>, vector<256x128xf32>
    %cst_61 = arith.constant dense<0.000000e+00> : vector<2x128xf32>
    %122 = tpu.matmul %120, %121, %cst_61 {dimension_numbers = #tpu.dot_dimension_numbers<[1], [0], [0], [1], [0, 0, 1, 1], [], []>} : vector<2x256xf32>, vector<256x128xf32>, vector<2x128xf32> -> vector<2x128xf32>
    %123 = arith.addf %63, %122 : vector<2x128xf32>
    %c0_62 = arith.constant 0 : index
    %c0_63 = arith.constant 0 : index
    %124 = vector.load %arg11[%c0_62, %c0_63] : memref<1x128xf32, #tpu.memory_space<vmem>>, vector<1x128xf32>
    %125 = vector.broadcast %124 : vector<1x128xf32> to vector<2x128xf32>
    %126 = arith.addf %123, %125 : vector<2x128xf32>
    %c0_64 = arith.constant 0 : index
    %c0_65 = arith.constant 0 : index
    %127 = vector.load %arg12[%c0_64, %c0_65] : memref<2x128xf32, #tpu.memory_space<vmem>>, vector<2x128xf32>
    tpu.vector_store %arg12[%c0_64, %c0_65], %126 {strides = array<i32>} : memref<2x128xf32, #tpu.memory_space<vmem>>, vector<2x128xf32>,
    return
  }
  func.func @transform_0(%arg0: i32) -> (i32, i32) {
    %c0_i32 = arith.constant 0 : i32
    %c0_i32_0 = arith.constant 0 : i32
    return %arg0, %c0_i32 : i32, i32
  }
  func.func @transform_1(%arg0: i32) -> (i32, i32) {
    %c0_i32 = arith.constant 0 : i32
    %c0_i32_0 = arith.constant 0 : i32
    %c0_i32_1 = arith.constant 0 : i32
    return %c0_i32, %c0_i32_0 : i32, i32
  }
  func.func @transform_2(%arg0: i32) -> (i32, i32) {
    %c0_i32 = arith.constant 0 : i32
    %c0_i32_0 = arith.constant 0 : i32
    %c0_i32_1 = arith.constant 0 : i32
    return %c0_i32, %c0_i32_0 : i32, i32
  }
  func.func @transform_3(%arg0: i32) -> (i32, i32) {
    %c0_i32 = arith.constant 0 : i32
    %c0_i32_0 = arith.constant 0 : i32
    %c0_i32_1 = arith.constant 0 : i32
    return %c0_i32, %c0_i32_0 : i32, i32
  }
  func.func @transform_4(%arg0: i32) -> (i32, i32) {
    %c0_i32 = arith.constant 0 : i32
    %c0_i32_0 = arith.constant 0 : i32
    %c0_i32_1 = arith.constant 0 : i32
    return %c0_i32, %c0_i32_0 : i32, i32
  }
  func.func @transform_5(%arg0: i32) -> (i32, i32) {
    %c0_i32 = arith.constant 0 : i32
    %c0_i32_0 = arith.constant 0 : i32
    %c0_i32_1 = arith.constant 0 : i32
    return %c0_i32, %c0_i32_0 : i32, i32
  }
  func.func @transform_6(%arg0: i32) -> (i32, i32) {
    %c0_i32 = arith.constant 0 : i32
    %c0_i32_0 = arith.constant 0 : i32
    %c0_i32_1 = arith.constant 0 : i32
    return %c0_i32, %c0_i32_0 : i32, i32
  }
  func.func @transform_7(%arg0: i32) -> (i32, i32) {
    %c0_i32 = arith.constant 0 : i32
    %c0_i32_0 = arith.constant 0 : i32
    %c0_i32_1 = arith.constant 0 : i32
    return %c0_i32, %c0_i32_0 : i32, i32
  }
  func.func @transform_8(%arg0: i32) -> (i32, i32) {
    %c0_i32 = arith.constant 0 : i32
    %c0_i32_0 = arith.constant 0 : i32
    %c0_i32_1 = arith.constant 0 : i32
    return %c0_i32, %c0_i32_0 : i32, i32
  }
  func.func @transform_9(%arg0: i32) -> (i32, i32) {
    %c0_i32 = arith.constant 0 : i32
    %c0_i32_0 = arith.constant 0 : i32
    %c0_i32_1 = arith.constant 0 : i32
    return %c0_i32, %c0_i32_0 : i32, i32
  }
  func.func @transform_10(%arg0: i32) -> (i32, i32) {
    %c0_i32 = arith.constant 0 : i32
    %c0_i32_0 = arith.constant 0 : i32
    %c0_i32_1 = arith.constant 0 : i32
    return %c0_i32, %c0_i32_0 : i32, i32
  }
  func.func @transform_11(%arg0: i32) -> (i32, i32) {
    %c0_i32 = arith.constant 0 : i32
    %c0_i32_0 = arith.constant 0 : i32
    return %arg0, %c0_i32 : i32, i32
  }
}

</mosaic_0001>

<bundles_post_ra>
// kernel: _tsmixer_pallas.1
= control target key start
LH: loop header
LB: loop body
LE: loop exit
PB: predicated region body
PF: predicated region fallthrough
CT: control target
= control target key end

     0   :  { %16 = vsyncpa [#allocation3], 0  ;;  %s2091_s0 = inlined_call_operand.hbm [shape: f32[2,128], index: 0, kind: input, shape index: {}]   ;;  %s2092_s1 = inlined_call_operand.hbm [shape: f32[128,128], index: 1, kind: input, shape index: {}]   ;;  %s2093_s2 = inlined_call_operand.hbm [shape: f32[128,128], index: 2, kind: input, shape index: {}]   ;;  %s2094_s3 = inlined_call_operand.hbm [shape: f32[128,512], index: 3, kind: input, shape index: {}]   ;;  %s2095_s4 = inlined_call_operand.vmem [shape: f32[1,512], index: 4, kind: input, shape index: {}]   ;;  %s2096_s5 = inlined_call_operand.hbm [shape: f32[512,128], index: 5, kind: input, shape index: {}]   ;;  %s2097_s6 = inlined_call_operand.vmem [shape: f32[1,128], index: 6, kind: input, shape index: {}]   ;;  %s2098_s7 = inlined_call_operand.hbm [shape: f32[128,256], index: 7, kind: input, shape index: {}]   ;;  %s2099_s8 = inlined_call_operand.vmem [shape: f32[1,256], index: 8, kind: input, shape index: {}]   ;;  %s2100_s9 = inlined_call_operand.hbm [shape: f32[256,128], index: 9, kind: input, shape index: {}]   ;;  %s2101_s10 = inlined_call_operand.vmem [shape: f32[1,128], index: 10, kind: input, shape index: {}]   ;;  %s2102_s11 = inlined_call_operand.hbm [shape: f32[2,128], index: 11, kind: output, shape index: {}]  }
   0x1   :  { %17 = vsyncpa [#allocation6], 0 }
   0x2   :  { %18 = vsyncpa [#allocation9], 0 }
   0x3   :  { %19 = vsyncpa [#allocation12], 0 }
   0x4   :  { %20 = vsyncpa [#allocation4], 0  ;;  %s1833_s17 = smov [#allocation5]  }
   0x5   :  { %s36_s18 = sshll.u32 %s1833_s17, 4  ;;  %s37_s18 = int_to_ptr.vmem [resolvable:$true] %s36_s18 }
   0x6   :  { %s1671_s19 = scalar_lea.vmem %s37_s18, 2048  ;;  %p1676_p1 = scmp.lt.s32.totalorder %s37_s18, %s37_s18 }
   0x7   :  { %p1672_p0 = scmp.ne.s32.totalorder %s37_s18, %s1671_s19  ;;  %p1677_p2 = scmp.lt.s32.totalorder %s1671_s19, %s1671_s19 }
   0x9   :  { %p1678_p3 = por %p1677_p2, %p1676_p1 }
   0xb   :  { %p1679_p4 = pnand %p1678_p3, %p1672_p0 }
   0xd   :  { %1682 = shalt.err (!%p1679_p4)
}
   0xe   :  { %s1834_s20 = smov 128   ;;  %s1835_s21 = smov 8  }
   0xf   :  { %42 = dma.hbm_to_vmem [thread:$0]  %s2092_s1, 2048, %s37_s18, [#allocation6], %s1834_s20, %s1834_s20, %s1835_s21  }
  0x10   :  { %s1836_s24 = smov [#allocation8]  }
  0x11   :  { %s60_s25 = sshll.u32 %s1836_s24, 4  ;;  %s61_s25 = int_to_ptr.vmem [resolvable:$true] %s60_s25 }
  0x12   :  { %s1691_s26 = scalar_lea.vmem %s61_s25, 8192  ;;  %p1696_p6 = scmp.lt.s32.totalorder %s61_s25, %s61_s25 }
  0x13   :  { %p1692_p5 = scmp.ne.s32.totalorder %s61_s25, %s1691_s26  ;;  %p1697_p7 = scmp.lt.s32.totalorder %s1691_s26, %s1691_s26 }
  0x15   :  { %p1698_p8 = por %p1697_p7, %p1696_p6 }
  0x17   :  { %p1699_p9 = pnand %p1698_p8, %p1692_p5 }
  0x19   :  { %1702 = shalt.err (!%p1699_p9)
}
  0x1a   :  { %s1837_s27 = smov 512   ;;  %s1838_s28 = smov 32  }
  0x1b   :  { %66 = dma.hbm_to_vmem [thread:$0]  %s2094_s3, 8192, %s61_s25, [#allocation9], %s1837_s27, %s1837_s27, %s1838_s28  }
  0x1c   :  { %s1839_s12 = smov [#allocation11]  }
  0x1d   :  { %s88_s13 = sshll.u32 %s1839_s12, 4  ;;  %s89_s13 = int_to_ptr.vmem [resolvable:$true] %s88_s13 }
  0x1e   :  { %s1711_s1 = scalar_lea.vmem %s89_s13, 4096  ;;  %p1716_p11 = scmp.lt.s32.totalorder %s89_s13, %s89_s13 }
  0x1f   :  { %p1712_p10 = scmp.ne.s32.totalorder %s89_s13, %s1711_s1  ;;  %p1717_p12 = scmp.lt.s32.totalorder %s1711_s1, %s1711_s1 }
  0x21   :  { %p1718_p13 = por %p1717_p12, %p1716_p11 }
  0x23   :  { %p1719_p0 = pnand %p1718_p13, %p1712_p10 }
  0x25   :  { %1722 = shalt.err (!%p1719_p0)
}
  0x26   :  { %s1840_s14 = smov 256   ;;  %s1841_s15 = smov 16  }
  0x27   :  { %94 = dma.hbm_to_vmem [thread:$0]  %s2098_s7, 4096, %s89_s13, [#allocation12], %s1840_s14, %s1840_s14, %s1841_s15  }
  0x28   :  { %s1842_s18 = smov [#allocation2]   ;;  %s1843_s3 = smov [#allocation7]  }
  0x29   :  { %s27_s19 = sshll.u32 %s1842_s18, 4  ;;  %s48_s22 = sshll.u32 %s1843_s3, 4  ;;  %s28_s19 = int_to_ptr.vmem [resolvable:$true] %s27_s19  ;;  %s49_s22 = int_to_ptr.vmem [resolvable:$true] %s48_s22 }
  0x2a   :  { %s1731_s23 = scalar_lea.vmem %s28_s19, 32  ;;  %p1736_p2 = scmp.lt.s32.totalorder %s28_s19, %s28_s19 }
  0x2b   :  { %p1732_p1 = scmp.ne.s32.totalorder %s28_s19, %s1731_s23  ;;  %p1737_p3 = scmp.lt.s32.totalorder %s1731_s23, %s1731_s23 }
  0x2d   :  { %p1738_p4 = por %p1737_p3, %p1736_p2 }
  0x2f   :  { %p1739_p5 = pnand %p1738_p4, %p1732_p1 }
  0x31   :  { %1742 = shalt.err (!%p1739_p5)
}
  0x32   :  { %30 = dma.hbm_to_vmem [thread:$0]  %s2091_s0, 32, %s28_s19, [#allocation3]  }
  0x33   :  { %s1751_s26 = scalar_lea.vmem %s49_s22, 2048  ;;  %p1756_p7 = scmp.lt.s32.totalorder %s49_s22, %s49_s22 }
  0x34   :  { %p1752_p6 = scmp.ne.s32.totalorder %s49_s22, %s1751_s26  ;;  %p1757_p8 = scmp.lt.s32.totalorder %s1751_s26, %s1751_s26 }
  0x36   :  { %p1758_p9 = por %p1757_p8, %p1756_p7 }
  0x38   :  { %p1759_p10 = pnand %p1758_p9, %p1752_p6 }
  0x3a   :  { %1762 = shalt.err (!%p1759_p10)
}
  0x3b   :  { %54 = dma.hbm_to_vmem [thread:$0]  %s2093_s2, 2048, %s49_s22, [#allocation6], %s1834_s20, %s1834_s20, %s1835_s21  }
  0x3c   :  { %s1844_s28 = smov [#allocation10]   ;;  %s1845_s30 = smov [#allocation13]  }
  0x3d   :  { %s74_s29 = sshll.u32 %s1844_s28, 4  ;;  %s102_s0 = sshll.u32 %s1845_s30, 4  ;;  %s75_s29 = int_to_ptr.vmem [resolvable:$true] %s74_s29  ;;  %s103_s0 = int_to_ptr.vmem [resolvable:$true] %s102_s0 }
  0x3e   :  { %s1771_s12 = scalar_lea.vmem %s75_s29, 8192  ;;  %p1776_p12 = scmp.lt.s32.totalorder %s75_s29, %s75_s29 }
  0x3f   :  { %p1772_p11 = scmp.ne.s32.totalorder %s75_s29, %s1771_s12  ;;  %p1777_p13 = scmp.lt.s32.totalorder %s1771_s12, %s1771_s12 }
  0x41   :  { %p1778_p0 = por %p1777_p13, %p1776_p12 }
  0x43   :  { %p1779_p1 = pnand %p1778_p0, %p1772_p11 }
  0x45   :  { %1782 = shalt.err (!%p1779_p1)
}
  0x46   :  { %80 = dma.hbm_to_vmem [thread:$0]  %s2096_s5, 8192, %s75_s29, [#allocation9], %s1834_s20, %s1834_s20, %s1835_s21  }
  0x47   :  { %s1791_s2 = scalar_lea.vmem %s103_s0, 4096  ;;  %p1796_p3 = scmp.lt.s32.totalorder %s103_s0, %s103_s0 }
  0x48   :  { %p1792_p2 = scmp.ne.s32.totalorder %s103_s0, %s1791_s2  ;;  %p1797_p4 = scmp.lt.s32.totalorder %s1791_s2, %s1791_s2 }
  0x4a   :  { %p1798_p5 = por %p1797_p4, %p1796_p3 }
  0x4c   :  { %p1799_p6 = pnand %p1798_p5, %p1792_p2 }
  0x4e   :  { %1802 = shalt.err (!%p1799_p6)
}
  0x4f   :  { %108 = dma.hbm_to_vmem [thread:$0]  %s2100_s9, 4096, %s103_s0, [#allocation12], %s1834_s20, %s1834_s20, %s1835_s21  }
  0x50   :  { %1823 = dma.done.wait [#allocation3], 32  }
  0x51   :  { %1824 = vsyncadd [#allocation3], 4294967264 }
  0x52   :  { %1825 = dma.done.wait [#allocation6], 4096  }
  0x53   :  { %1826 = vsyncadd [#allocation6], 4294963200 }
  0x54   :  { %1827 = dma.done.wait [#allocation9], 16384  }
  0x55   :  { %1828 = vsyncadd [#allocation9], 4294950912 }
  0x56   :  { %1829 = dma.done.wait [#allocation12], 8192  }
  0x57   :  { %1830 = vsyncadd [#allocation12], 4294959104  ;;  %v1846_v0 = vmov 0.0   ;;  %vm1847_vm0 = vmmov 0   ;;  %v148_v1 = vld [vmem:[#allocation5 + $0x78] sm:$0xff]  ;;  %v147_v2 = vld [vmem:[#allocation5 + $0x70] sm:$0xff] }
  0x58   :  { %1478 = vmatprep.subr.mxu0 %v1846_v0  ;;  %1513 = vmatprep.subr.mxu1 %v1846_v0  ;;  %v146_v3 = vld [vmem:[#allocation5 + $0x68] sm:$0xff]  ;;  %v145_v4 = vld [vmem:[#allocation5 + $0x60] sm:$0xff]  ;;  %v144_v5 = vld [vmem:[#allocation5 + $0x58] sm:$0xff]  ;;  %s1848_s17 = smov [#allocation14]  }
  0x59   :  { %1510 = vmatprep.mubr.msk.f32.mxu0 %vm1847_vm0, %v1846_v0  ;;  %1545 = vmatprep.mubr.msk.f32.mxu1 %vm1847_vm0, %v1846_v0  ;;  %v143_v6 = vld [vmem:[#allocation5 + $0x50] sm:$0xff]  ;;  %v142_v7 = vld [vmem:[#allocation5 + $0x48] sm:$0xff]  ;;  %v141_v8 = vld [vmem:[#allocation5 + $0x40] sm:$0xff]  ;;  %s1291_s18 = sshll.u32 %s1848_s17, 4  ;;  %s1292_s18 = int_to_ptr.vmem [resolvable:$true] %s1291_s18 }
  0x5a   :  { %1479 = vmatpush3.msra.mxu0 %v148_v1  ;;  %1514 = vmatpush3.msra.mxu1 %v148_v1  ;;  %v140_v9 = vld [vmem:[#allocation5 + $0x38] sm:$0xff]  ;;  %v139_v10 = vld [vmem:[#allocation5 + $0x30] sm:$0xff]  ;;  %v138_v11 = vld [vmem:[#allocation5 + $0x28] sm:$0xff]  ;;  %s1803_s19 = scalar_lea.vmem %s1292_s18, 32  ;;  %p1808_p8 = scmp.lt.s32.totalorder %s1292_s18, %s1292_s18 }
  0x5b   :  { %1480 = vmatprep.subr.mxu0 %v1846_v0  ;;  %1515 = vmatprep.subr.mxu1 %v1846_v0  ;;  %v137_v12 = vld [vmem:[#allocation5 + $0x20] sm:$0xff]  ;;  %v136_v13 = vld [vmem:[#allocation5 + $0x18] sm:$0xff]  ;;  %v135_v14 = vld [vmem:[#allocation5 + $0x10] sm:$0xff]  ;;  %p1804_p7 = scmp.ne.s32.totalorder %s1292_s18, %s1803_s19  ;;  %p1809_p9 = scmp.lt.s32.totalorder %s1803_s19, %s1803_s19 }
  0x5c   :  { %1481 = vmatpush3.msra.mxu0 %v147_v2  ;;  %1516 = vmatpush3.msra.mxu1 %v147_v2  ;;  %v1972_v15 = vld [vmem:[#allocation2] sm:$0x3]  ;;  %v134_v16 = vld [vmem:[#allocation5 + $0x8] sm:$0xff]  ;;  %v133_v17 = vld [vmem:[#allocation5] sm:$0xff] }
  0x5d   :  { %1482 = vmatprep.subr.mxu0 %v1846_v0  ;;  %1517 = vmatprep.subr.mxu1 %v1846_v0  ;;  %v219_v18 = vmul.f32 %v1972_v15, %v1972_v15  ;;  %v358_v19 = vld [vmem:[#allocation8 + $0x1e8] sm:$0xff]  ;;  %v360_v20 = vld [vmem:[#allocation8 + $0x1f8] sm:$0xff]  ;;  %v357_v21 = vld [vmem:[#allocation8 + $0x1e0] sm:$0xff]  ;;  %p1810_p10 = por %p1809_p9, %p1808_p8 }
  0x5e   :  { %1483 = vmatpush3.msra.mxu0 %v146_v3  ;;  %1518 = vmatpush3.msra.mxu1 %v146_v3  ;;  %v359_v22 = vld [vmem:[#allocation8 + $0x1f0] sm:$0xff]  ;;  %v354_v23 = vld [vmem:[#allocation8 + $0x1c8] sm:$0xff]  ;;  %v356_v24 = vld [vmem:[#allocation8 + $0x1d8] sm:$0xff] }
  0x5f   :  { %1484 = vmatprep.subr.mxu0 %v1846_v0  ;;  %1519 = vmatprep.subr.mxu1 %v1846_v0  ;;  %v353_v25 = vld [vmem:[#allocation8 + $0x1c0] sm:$0xff]  ;;  %v355_v26 = vld [vmem:[#allocation8 + $0x1d0] sm:$0xff]  ;;  %v350_v27 = vld [vmem:[#allocation8 + $0x1a8] sm:$0xff]  ;;  %p1811_p11 = pnand %p1810_p10, %p1804_p7 }
  0x60   :  { %1485 = vmatpush3.msra.mxu0 %v145_v4  ;;  %1520 = vmatpush3.msra.mxu1 %v145_v4  ;;  %v352_v28 = vld [vmem:[#allocation8 + $0x1b8] sm:$0xff]  ;;  %v349_v29 = vld [vmem:[#allocation8 + $0x1a0] sm:$0xff]  ;;  %v351_v30 = vld [vmem:[#allocation8 + $0x1b0] sm:$0xff] }
  0x61   :  { %1486 = vmatprep.subr.mxu0 %v1846_v0  ;;  %1521 = vmatprep.subr.mxu1 %v1846_v0  ;;  %v346_v31 = vld [vmem:[#allocation8 + $0x188] sm:$0xff]  ;;  %v348_v32 = vld [vmem:[#allocation8 + $0x198] sm:$0xff]  ;;  %v345_v33 = vld [vmem:[#allocation8 + $0x180] sm:$0xff] }
  0x62   :  { %1487 = vmatpush3.msra.mxu0 %v144_v5  ;;  %1522 = vmatpush3.msra.mxu1 %v144_v5  ;;  %v347_v34 = vld [vmem:[#allocation8 + $0x190] sm:$0xff]  ;;  %v342_v35 = vld [vmem:[#allocation8 + $0x168] sm:$0xff]  ;;  %v344_v36 = vld [vmem:[#allocation8 + $0x178] sm:$0xff] }
  0x63   :  { %1488 = vmatprep.subr.mxu0 %v1846_v0  ;;  %1523 = vmatprep.subr.mxu1 %v1846_v0  ;;  %v341_v37 = vld [vmem:[#allocation8 + $0x160] sm:$0xff]  ;;  %v343_v38 = vld [vmem:[#allocation8 + $0x170] sm:$0xff]  ;;  %v338_v39 = vld [vmem:[#allocation8 + $0x148] sm:$0xff] }
  0x64   :  { %1489 = vmatpush3.msra.mxu0 %v143_v6  ;;  %1524 = vmatpush3.msra.mxu1 %v143_v6  ;;  %v340_v40 = vld [vmem:[#allocation8 + $0x158] sm:$0xff]  ;;  %v337_v41 = vld [vmem:[#allocation8 + $0x140] sm:$0xff]  ;;  %v339_v42 = vld [vmem:[#allocation8 + $0x150] sm:$0xff] }
  0x65   :  { %1490 = vmatprep.subr.mxu0 %v1846_v0  ;;  %1525 = vmatprep.subr.mxu1 %v1846_v0  ;;  %v334_v43 = vld [vmem:[#allocation8 + $0x128] sm:$0xff]  ;;  %v336_v44 = vld [vmem:[#allocation8 + $0x138] sm:$0xff]  ;;  %v333_v45 = vld [vmem:[#allocation8 + $0x120] sm:$0xff] }
  0x66   :  { %1491 = vmatpush3.msra.mxu0 %v142_v7  ;;  %1526 = vmatpush3.msra.mxu1 %v142_v7  ;;  %v335_v46 = vld [vmem:[#allocation8 + $0x130] sm:$0xff]  ;;  %v330_v47 = vld [vmem:[#allocation8 + $0x108] sm:$0xff]  ;;  %v332_v48 = vld [vmem:[#allocation8 + $0x118] sm:$0xff] }
  0x67   :  { %1492 = vmatprep.subr.mxu0 %v1846_v0  ;;  %1527 = vmatprep.subr.mxu1 %v1846_v0  ;;  %v329_v49 = vld [vmem:[#allocation8 + $0x100] sm:$0xff]  ;;  %v331_v50 = vld [vmem:[#allocation8 + $0x110] sm:$0xff]  ;;  %v326_v51 = vld [vmem:[#allocation8 + $0xe8] sm:$0xff] }
  0x68   :  { %1493 = vmatpush3.msra.mxu0 %v141_v8  ;;  %1528 = vmatpush3.msra.mxu1 %v141_v8  ;;  %v328_v52 = vld [vmem:[#allocation8 + $0xf8] sm:$0xff]  ;;  %v325_v53 = vld [vmem:[#allocation8 + $0xe0] sm:$0xff]  ;;  %v327_v54 = vld [vmem:[#allocation8 + $0xf0] sm:$0xff] }
  0x69   :  { %1494 = vmatprep.subr.mxu0 %v1846_v0  ;;  %1529 = vmatprep.subr.mxu1 %v1846_v0  ;;  %v322_v55 = vld [vmem:[#allocation8 + $0xc8] sm:$0xff]  ;;  %v324_v56 = vld [vmem:[#allocation8 + $0xd8] sm:$0xff]  ;;  %v321_v57 = vld [vmem:[#allocation8 + $0xc0] sm:$0xff] }
  0x6a   :  { %1495 = vmatpush3.msra.mxu0 %v140_v9  ;;  %1530 = vmatpush3.msra.mxu1 %v140_v9  ;;  %v323_v58 = vld [vmem:[#allocation8 + $0xd0] sm:$0xff]  ;;  %v318_v59 = vld [vmem:[#allocation8 + $0xa8] sm:$0xff]  ;;  %v320_v60 = vld [vmem:[#allocation8 + $0xb8] sm:$0xff] }
  0x6b   :  { %1496 = vmatprep.subr.mxu0 %v1846_v0  ;;  %1531 = vmatprep.subr.mxu1 %v1846_v0  ;;  %v317_v61 = vld [vmem:[#allocation8 + $0xa0] sm:$0xff]  ;;  %v319_v62 = vld [vmem:[#allocation8 + $0xb0] sm:$0xff]  ;;  %v314_v63 = vld [vmem:[#allocation8 + $0x88] sm:$0xff] }
  0x6c   :  { %1497 = vmatpush3.msra.mxu0 %v139_v10  ;;  %1532 = vmatpush3.msra.mxu1 %v139_v10  ;;  %v316_v1 = vld [vmem:[#allocation8 + $0x98] sm:$0xff]  ;;  %v313_v2 = vld [vmem:[#allocation8 + $0x80] sm:$0xff]  ;;  %v315_v3 = vld [vmem:[#allocation8 + $0x90] sm:$0xff] }
  0x6d   :  { %1498 = vmatprep.subr.mxu0 %v1846_v0  ;;  %1533 = vmatprep.subr.mxu1 %v1846_v0  ;;  %v310_v4 = vld [vmem:[#allocation8 + $0x68] sm:$0xff]  ;;  %v312_v5 = vld [vmem:[#allocation8 + $0x78] sm:$0xff]  ;;  %v309_v6 = vld [vmem:[#allocation8 + $0x60] sm:$0xff] }
  0x6e   :  { %1499 = vmatpush3.msra.mxu0 %v138_v11  ;;  %1534 = vmatpush3.msra.mxu1 %v138_v11  ;;  %v311_v7 = vld [vmem:[#allocation8 + $0x70] sm:$0xff]  ;;  %v306_v8 = vld [vmem:[#allocation8 + $0x48] sm:$0xff]  ;;  %v308_v9 = vld [vmem:[#allocation8 + $0x58] sm:$0xff] }
  0x6f   :  { %1500 = vmatprep.subr.mxu0 %v1846_v0  ;;  %1535 = vmatprep.subr.mxu1 %v1846_v0  ;;  %v305_v10 = vld [vmem:[#allocation8 + $0x40] sm:$0xff]  ;;  %v307_v11 = vld [vmem:[#allocation8 + $0x50] sm:$0xff] }
  0x70   :  { %1501 = vmatpush3.msra.mxu0 %v137_v12  ;;  %1536 = vmatpush3.msra.mxu1 %v137_v12  ;;  %v302_v12 = vld [vmem:[#allocation8 + $0x28] sm:$0xff] }
  0x71   :  { %1502 = vmatprep.subr.mxu0 %v1846_v0  ;;  %1537 = vmatprep.subr.mxu1 %v1846_v0 }
  0x72   :  { %1503 = vmatpush3.msra.mxu0 %v136_v13  ;;  %1538 = vmatpush3.msra.mxu1 %v136_v13  ;;  %v304_v13 = vld [vmem:[#allocation8 + $0x38] sm:$0xff] }
  0x73   :  { %1504 = vmatprep.subr.mxu0 %v1846_v0  ;;  %1539 = vmatprep.subr.mxu1 %v1846_v0 }
  0x74   :  { %1505 = vmatpush3.msra.mxu0 %v135_v14  ;;  %1540 = vmatpush3.msra.mxu1 %v135_v14  ;;  %v301_v14 = vld [vmem:[#allocation8 + $0x20] sm:$0xff] }
  0x75   :  { %1506 = vmatprep.subr.mxu0 %v1846_v0  ;;  %1541 = vmatprep.subr.mxu1 %v1846_v0 }
  0x76   :  { %1507 = vmatpush3.msra.mxu0 %v134_v16  ;;  %1542 = vmatpush3.msra.mxu1 %v134_v16  ;;  %v303_v16 = vld [vmem:[#allocation8 + $0x30] sm:$0xff] }
  0x77   :  { %1508 = vmatprep.subr.mxu0 %v1846_v0  ;;  %1543 = vmatprep.subr.mxu1 %v1846_v0 }
  0x78   :  { %1509 = vmatpush3.msra.mxu0 %v133_v17  ;;  %1544 = vmatpush3.msra.mxu1 %v133_v17  ;;  %v298_v17 = vld [vmem:[#allocation8 + $0x8] sm:$0xff] }
  0x79   :  { %1511 = vmatmul.mubr.f32.vlgmr.msra.gmra.mxu0 %v1972_v15  ;;  %1546 = vmatmul.mubr.f32.vlgmr.msra.gmra.mxu1 %v219_v18  ;;  %v300_v18 = vld [vmem:[#allocation8 + $0x18] sm:$0xff] }
  0x7a   :  { %383 = vmatprep.subr.mxu0 %v358_v19  ;;  %454 = vmatprep.subr.mxu1 %v360_v20  ;;  %v297_v19 = vld [vmem:[#allocation8] sm:$0xff]  ;;  %v299_v20 = vld [vmem:[#allocation8 + $0x10] sm:$0xff] }
  0x7b   :  { %384 = vmatpush1.msra.mxu0 %v357_v21  ;;  %455 = vmatpush1.msra.mxu1 %v359_v22 }
  0x7c   :  { %385 = vmatprep.subr.mxu0 %v354_v23  ;;  %456 = vmatprep.subr.mxu1 %v356_v24 }
  0x7d   :  { %386 = vmatpush1.msra.mxu0 %v353_v25  ;;  %457 = vmatpush1.msra.mxu1 %v355_v26 }
  0x7e   :  { %387 = vmatprep.subr.mxu0 %v350_v27  ;;  %458 = vmatprep.subr.mxu1 %v352_v28 }
  0x7f   :  { %388 = vmatpush1.msra.mxu0 %v349_v29  ;;  %459 = vmatpush1.msra.mxu1 %v351_v30 }
  0x80   :  { %389 = vmatprep.subr.mxu0 %v346_v31  ;;  %460 = vmatprep.subr.mxu1 %v348_v32  ;;  %v660_v32 = vld [vmem:[#allocation10 + $0xf8] sm:$0xff] }
  0x81   :  { %447 = vmatprep.mubr.f32.mxu0 %v1846_v0  ;;  %518 = vmatprep.mubr.f32.mxu1 %v1846_v0 }
  0x82   :  { %390 = vmatpush1.msra.mxu0 %v345_v33  ;;  %461 = vmatpush1.msra.mxu1 %v347_v34  ;;  %v692_v33 = vld [vmem:[#allocation10 + $0x1f8] sm:$0xff] }
  0x83   :  { %391 = vmatprep.subr.mxu0 %v342_v35  ;;  %462 = vmatprep.subr.mxu1 %v344_v36  ;;  %v644_v34 = vld [vmem:[#allocation10 + $0x78] sm:$0xff]  ;;  %v659_v36 = vld [vmem:[#allocation10 + $0xf0] sm:$0xff] }
  0x84   :  { %392 = vmatpush1.msra.mxu0 %v341_v37  ;;  %463 = vmatpush1.msra.mxu1 %v343_v38  ;;  %v676_v35 = vld [vmem:[#allocation10 + $0x178] sm:$0xff]  ;;  %v691_v37 = vld [vmem:[#allocation10 + $0x1f0] sm:$0xff] }
  0x85   :  { %393 = vmatprep.subr.mxu0 %v338_v39  ;;  %464 = vmatprep.subr.mxu1 %v340_v40  ;;  %v643_v38 = vld [vmem:[#allocation10 + $0x70] sm:$0xff]  ;;  %v690_v40 = vld [vmem:[#allocation10 + $0x1e8] sm:$0xff] }
  0x86   :  { %394 = vmatpush1.msra.mxu0 %v337_v41  ;;  %465 = vmatpush1.msra.mxu1 %v339_v42  ;;  %v675_v39 = vld [vmem:[#allocation10 + $0x170] sm:$0xff]  ;;  %v642_v41 = vld [vmem:[#allocation10 + $0x68] sm:$0xff] }
  0x87   :  { %395 = vmatprep.subr.mxu0 %v334_v43  ;;  %466 = vmatprep.subr.mxu1 %v336_v44  ;;  %v674_v42 = vld [vmem:[#allocation10 + $0x168] sm:$0xff]  ;;  %v657_v43 = vld [vmem:[#allocation10 + $0xe0] sm:$0xff] }
  0x88   :  { %396 = vmatpush1.msra.mxu0 %v333_v45  ;;  %467 = vmatpush1.msra.mxu1 %v335_v46  ;;  %v689_v44 = vld [vmem:[#allocation10 + $0x1e0] sm:$0xff] }
  0x89   :  { %397 = vmatprep.subr.mxu0 %v330_v47  ;;  %468 = vmatprep.subr.mxu1 %v332_v48  ;;  %v641_v45 = vld [vmem:[#allocation10 + $0x60] sm:$0xff]  ;;  %v656_v47 = vld [vmem:[#allocation10 + $0xd8] sm:$0xff] }
  0x8a   :  { %398 = vmatpush1.msra.mxu0 %v329_v49  ;;  %469 = vmatpush1.msra.mxu1 %v331_v50  ;;  %v673_v46 = vld [vmem:[#allocation10 + $0x160] sm:$0xff]  ;;  %v688_v48 = vld [vmem:[#allocation10 + $0x1d8] sm:$0xff] }
  0x8b   :  { %399 = vmatprep.subr.mxu0 %v326_v51  ;;  %470 = vmatprep.subr.mxu1 %v328_v52  ;;  %v640_v49 = vld [vmem:[#allocation10 + $0x58] sm:$0xff]  ;;  %v655_v51 = vld [vmem:[#allocation10 + $0xd0] sm:$0xff] }
  0x8c   :  { %400 = vmatpush1.msra.mxu0 %v325_v53  ;;  %471 = vmatpush1.msra.mxu1 %v327_v54  ;;  %v672_v50 = vld [vmem:[#allocation10 + $0x158] sm:$0xff]  ;;  %v687_v52 = vld [vmem:[#allocation10 + $0x1d0] sm:$0xff] }
  0x8d   :  { %401 = vmatprep.subr.mxu0 %v322_v55  ;;  %472 = vmatprep.subr.mxu1 %v324_v56  ;;  %v639_v53 = vld [vmem:[#allocation10 + $0x50] sm:$0xff]  ;;  %v654_v55 = vld [vmem:[#allocation10 + $0xc8] sm:$0xff] }
  0x8e   :  { %402 = vmatpush1.msra.mxu0 %v321_v57  ;;  %473 = vmatpush1.msra.mxu1 %v323_v58  ;;  %v671_v54 = vld [vmem:[#allocation10 + $0x150] sm:$0xff]  ;;  %v686_v56 = vld [vmem:[#allocation10 + $0x1c8] sm:$0xff] }
  0x8f   :  { %403 = vmatprep.subr.mxu0 %v318_v59  ;;  %474 = vmatprep.subr.mxu1 %v320_v60  ;;  %v638_v57 = vld [vmem:[#allocation10 + $0x48] sm:$0xff]  ;;  %v653_v59 = vld [vmem:[#allocation10 + $0xc0] sm:$0xff] }
  0x90   :  { %404 = vmatpush1.msra.mxu0 %v317_v61  ;;  %475 = vmatpush1.msra.mxu1 %v319_v62  ;;  %v670_v58 = vld [vmem:[#allocation10 + $0x148] sm:$0xff]  ;;  %v685_v60 = vld [vmem:[#allocation10 + $0x1c0] sm:$0xff] }
  0x91   :  { %405 = vmatprep.subr.mxu0 %v314_v63  ;;  %476 = vmatprep.subr.mxu1 %v316_v1  ;;  %v637_v61 = vld [vmem:[#allocation10 + $0x40] sm:$0xff]  ;;  %v652_v63 = vld [vmem:[#allocation10 + $0xb8] sm:$0xff] }
  0x92   :  { %406 = vmatpush1.msra.mxu0 %v313_v2  ;;  %477 = vmatpush1.msra.mxu1 %v315_v3  ;;  %v669_v62 = vld [vmem:[#allocation10 + $0x140] sm:$0xff]  ;;  %v684_v1 = vld [vmem:[#allocation10 + $0x1b8] sm:$0xff] }
  0x93   :  { %407 = vmatprep.subr.mxu0 %v310_v4  ;;  %478 = vmatprep.subr.mxu1 %v312_v5  ;;  %v636_v2 = vld [vmem:[#allocation10 + $0x38] sm:$0xff]  ;;  %v651_v4 = vld [vmem:[#allocation10 + $0xb0] sm:$0xff] }
  0x94   :  { %408 = vmatpush1.msra.mxu0 %v309_v6  ;;  %479 = vmatpush1.msra.mxu1 %v311_v7  ;;  %v668_v3 = vld [vmem:[#allocation10 + $0x138] sm:$0xff]  ;;  %v683_v5 = vld [vmem:[#allocation10 + $0x1b0] sm:$0xff] }
  0x95   :  { %409 = vmatprep.subr.mxu0 %v306_v8  ;;  %480 = vmatprep.subr.mxu1 %v308_v9  ;;  %v635_v6 = vld [vmem:[#allocation10 + $0x30] sm:$0xff]  ;;  %v650_v8 = vld [vmem:[#allocation10 + $0xa8] sm:$0xff] }
  0x96   :  { %410 = vmatpush1.msra.mxu0 %v305_v10  ;;  %481 = vmatpush1.msra.mxu1 %v307_v11  ;;  %v667_v7 = vld [vmem:[#allocation10 + $0x130] sm:$0xff]  ;;  %v682_v9 = vld [vmem:[#allocation10 + $0x1a8] sm:$0xff] }
  0x97   :  { %411 = vmatprep.subr.mxu0 %v302_v12  ;;  %482 = vmatprep.subr.mxu1 %v304_v13  ;;  %v634_v10 = vld [vmem:[#allocation10 + $0x28] sm:$0xff]  ;;  %v649_v12 = vld [vmem:[#allocation10 + $0xa0] sm:$0xff] }
  0x98   :  { %412 = vmatpush1.msra.mxu0 %v301_v14  ;;  %483 = vmatpush1.msra.mxu1 %v303_v16  ;;  %v666_v11 = vld [vmem:[#allocation10 + $0x128] sm:$0xff]  ;;  %v681_v13 = vld [vmem:[#allocation10 + $0x1a0] sm:$0xff] }
  0x99   :  { %413 = vmatprep.subr.mxu0 %v298_v17  ;;  %484 = vmatprep.subr.mxu1 %v300_v18  ;;  %v633_v14 = vld [vmem:[#allocation10 + $0x20] sm:$0xff]  ;;  %v648_v17 = vld [vmem:[#allocation10 + $0x98] sm:$0xff] }
  0x9a   :  { %414 = vmatpush1.msra.mxu0 %v297_v19  ;;  %485 = vmatpush1.msra.mxu1 %v299_v20  ;;  %v665_v16 = vld [vmem:[#allocation10 + $0x120] sm:$0xff]  ;;  %v680_v18 = vld [vmem:[#allocation10 + $0x198] sm:$0xff] }
  0x9b   :  { %1339 = vmatprep.subr.mxu0 %v660_v32  ;;  %1374 = vmatprep.subr.mxu1 %v692_v33  ;;  %v632_v19 = vld [vmem:[#allocation10 + $0x18] sm:$0xff]  ;;  %v661_v32 = vld [vmem:[#allocation10 + $0x100] sm:$0xff]  ;;  %v363_v33 = vlaneseq }
  0x9c   :  { %v664_v20 = vld [vmem:[#allocation10 + $0x118] sm:$0xff] }
 0x139   :  { %v215_v21 = vpop.f32.mrf.mxu0  ;;  %v286_v22 = vpop.f32.mrf.mxu1 }
 0x13a   :  { %v290_v23 = vmul.f32 %v215_v21, %v215_v21  ;;  %v293_v29 = vsub.f32 %v1972_v15, %v215_v21  ;;  %v658_v15 = vld [vmem:[#allocation10 + $0xe8] sm:$0xff]  ;;  %v647_v21 = vld [vmem:[#allocation10 + $0x90] sm:$0xff] }
 0x13b   :  { %v1512_v24 = vpop.f32.mrf.mxu0  ;;  %v1547_v25 = vpop.f32.mrf.mxu1 }
 0x13c   :  { %v291_v26 = vsub.f32 %v286_v22, %v290_v23  ;;  %v679_v22 = vld [vmem:[#allocation10 + $0x190] sm:$0xff]  ;;  %v646_v25 = vld [vmem:[#allocation10 + $0x88] sm:$0xff] }
 0x13d   :  { %v631_v23 = vld [vmem:[#allocation10 + $0x10] sm:$0xff] }
 0x13e   :  { %v292_v27 = vmax.f32 %v291_v26, 0.0  ;;  %v663_v24 = vld [vmem:[#allocation10 + $0x110] sm:$0xff]  ;;  %v678_v26 = vld [vmem:[#allocation10 + $0x188] sm:$0xff] }
 0x140   :  { %v294_v28 = vadd.f32 1e-05, %v292_v27  ;;  %v630_v27 = vld [vmem:[#allocation10 + $0x8] sm:$0xff] }
 0x142   :  { %1634 = vrsqrt.f32 %v294_v28  ;;  %v662_v28 = vld [vmem:[#allocation10 + $0x108] sm:$0xff] }
 0x14f   :  { %v1635_v30 = vpop.eup %1634 }
 0x150   :  { %v296_v31 = vmul.f32 %v1635_v30, %v293_v29  ;;  %v645_v29 = vld [vmem:[#allocation10 + $0x80] sm:$0xff] }
 0x151   :  { %v677_v30 = vld [vmem:[#allocation10 + $0x180] sm:$0xff] }
 0x152   :  { %448 = vmatmul.mubr.f32.vlgmr.msra.gmra.mxu0 %v296_v31  ;;  %519 = vmatmul.mubr.f32.vlgmr.msra.gmra.mxu1 %v296_v31  ;;  %v629_v31 = vld [vmem:[#allocation10] sm:$0xff] }
 0x153   :  { %1340 = vmatpush3.msra.mxu0 %v644_v34  ;;  %1375 = vmatpush3.msra.mxu1 %v676_v35  ;;  %v1988_v34 = vshrl.u32 %v363_v33, 7 }
 0x154   :  { %1341 = vmatprep.subr.mxu0 %v659_v36  ;;  %1376 = vmatprep.subr.mxu1 %v691_v37  ;;  %v361_v37 = vld [vmem:[%s2095_s4] sm:$0xf] }
 0x155   :  { %1342 = vmatpush3.msra.mxu0 %v643_v38  ;;  %1377 = vmatpush3.msra.mxu1 %v675_v39  ;;  %v365_v35 = vsub.s32 0, %v1988_v34  ;;  %v373_v36 = vsub.s32 2, %v1988_v34  ;;  %v369_v38 = vsub.s32 1, %v1988_v34  ;;  %v377_v39 = vsub.s32 3, %v1988_v34 }
 0x156   :  { %1343 = vmatprep.subr.mxu0 %v658_v15  ;;  %1378 = vmatprep.subr.mxu1 %v690_v40 }
 0x157   :  { %1344 = vmatpush3.msra.mxu0 %v642_v41  ;;  %1379 = vmatpush3.msra.mxu1 %v674_v42  ;;  %v366_v15 = vrot.slane %v361_v37, %v365_v35  ;;  %v374_v40 = vrot.slane %v361_v37, %v373_v36  ;;  %v370_v41 = vrot.slane %v361_v37, %v369_v38 }
 0x158   :  { %1345 = vmatprep.subr.mxu0 %v657_v43  ;;  %1380 = vmatprep.subr.mxu1 %v689_v44  ;;  %v378_v42 = vrot.slane %v361_v37, %v377_v39 }
 0x159   :  { %1346 = vmatpush3.msra.mxu0 %v641_v45  ;;  %1381 = vmatpush3.msra.mxu1 %v673_v46 }
 0x15a   :  { %1347 = vmatprep.subr.mxu0 %v656_v47  ;;  %1382 = vmatprep.subr.mxu1 %v688_v48 }
 0x15b   :  { %1348 = vmatpush3.msra.mxu0 %v640_v49  ;;  %1383 = vmatpush3.msra.mxu1 %v672_v50 }
 0x15c   :  { %1349 = vmatprep.subr.mxu0 %v655_v51  ;;  %1384 = vmatprep.subr.mxu1 %v687_v52 }
 0x15d   :  { %1350 = vmatpush3.msra.mxu0 %v639_v53  ;;  %1385 = vmatpush3.msra.mxu1 %v671_v54 }
 0x15e   :  { %1351 = vmatprep.subr.mxu0 %v654_v55  ;;  %1386 = vmatprep.subr.mxu1 %v686_v56 }
 0x15f   :  { %1352 = vmatpush3.msra.mxu0 %v638_v57  ;;  %1387 = vmatpush3.msra.mxu1 %v670_v58 }
 0x160   :  { %1353 = vmatprep.subr.mxu0 %v653_v59  ;;  %1388 = vmatprep.subr.mxu1 %v685_v60 }
 0x161   :  { %1354 = vmatpush3.msra.mxu0 %v637_v61  ;;  %1389 = vmatpush3.msra.mxu1 %v669_v62 }
 0x162   :  { %1355 = vmatprep.subr.mxu0 %v652_v63  ;;  %1390 = vmatprep.subr.mxu1 %v684_v1 }
 0x163   :  { %1356 = vmatpush3.msra.mxu0 %v636_v2  ;;  %1391 = vmatpush3.msra.mxu1 %v668_v3 }
 0x164   :  { %1357 = vmatprep.subr.mxu0 %v651_v4  ;;  %1392 = vmatprep.subr.mxu1 %v683_v5 }
 0x165   :  { %1358 = vmatpush3.msra.mxu0 %v635_v6  ;;  %1393 = vmatpush3.msra.mxu1 %v667_v7 }
 0x166   :  { %1359 = vmatprep.subr.mxu0 %v650_v8  ;;  %1394 = vmatprep.subr.mxu1 %v682_v9 }
 0x167   :  { %1360 = vmatpush3.msra.mxu0 %v634_v10  ;;  %1395 = vmatpush3.msra.mxu1 %v666_v11 }
 0x168   :  { %1361 = vmatprep.subr.mxu0 %v649_v12  ;;  %1396 = vmatprep.subr.mxu1 %v681_v13 }
 0x169   :  { %1362 = vmatpush3.msra.mxu0 %v633_v14  ;;  %1397 = vmatpush3.msra.mxu1 %v665_v16 }
 0x16a   :  { %1363 = vmatprep.subr.mxu0 %v648_v17  ;;  %1398 = vmatprep.subr.mxu1 %v680_v18 }
 0x16b   :  { %1364 = vmatpush3.msra.mxu0 %v632_v19  ;;  %1399 = vmatpush3.msra.mxu1 %v664_v20 }
 0x16c   :  { %1365 = vmatprep.subr.mxu0 %v647_v21  ;;  %1400 = vmatprep.subr.mxu1 %v679_v22 }
 0x16d   :  { %1366 = vmatpush3.msra.mxu0 %v631_v23  ;;  %1401 = vmatpush3.msra.mxu1 %v663_v24 }
 0x16e   :  { %1367 = vmatprep.subr.mxu0 %v646_v25  ;;  %1402 = vmatprep.subr.mxu1 %v678_v26 }
 0x16f   :  { %1368 = vmatpush3.msra.mxu0 %v630_v27  ;;  %1403 = vmatpush3.msra.mxu1 %v662_v28 }
 0x170   :  { %1369 = vmatprep.subr.mxu0 %v645_v29  ;;  %1404 = vmatprep.subr.mxu1 %v677_v30 }
 0x171   :  { %1370 = vmatpush3.msra.mxu0 %v629_v31  ;;  %1405 = vmatpush3.msra.mxu1 %v661_v32 }
 0x172   :  { %1548 = vmatprep.subr.mxu0 %v1846_v0  ;;  %1583 = vmatprep.subr.mxu1 %v1846_v0 }
 0x212   :  { %v449_v43 = vpop.f32.mrf.mxu0  ;;  %v520_v44 = vpop.f32.mrf.mxu1 }
 0x213   :  { %v2001_v45 = vadd.f32 %v449_v43, %v366_v15  ;;  %v2003_v46 = vadd.f32 %v520_v44, %v374_v40 }
 0x214   :  { %v451_v47 = vpop.f32.mrf.mxu0  ;;  %v522_v48 = vpop.f32.mrf.mxu1 }
 0x215   :  { %v2006_v49 = vmul.f32 0.70710677, %v2001_v45  ;;  %v2009_v50 = vmul.f32 0.70710677, %v2003_v46  ;;  %v2011_v51 = vadd.f32 %v451_v47, %v370_v41  ;;  %v2013_v52 = vadd.f32 %v522_v48, %v378_v42 }
 0x217   :  { %v529_v53 = vand.u32 2147483647, %v2006_v49  ;;  %v531_v54 = vand.u32 2147483647, %v2009_v50  ;;  %v2018_v55 = vmul.f32 0.70710677, %v2011_v51 }
 0x218   :  { %v2021_v56 = vmul.f32 0.70710677, %v2013_v52  ;;  %vm609_vm1 = vcmp.lt.f32.partialorder %v2006_v49, 0.0  ;;  %vm611_vm2 = vcmp.lt.f32.partialorder %v2009_v50, 0.0 }
 0x219   :  { %v533_v57 = vmul.f32 0.3275911, %v529_v53  ;;  %v535_v58 = vmul.f32 0.3275911, %v531_v54  ;;  %v530_v59 = vand.u32 2147483647, %v2018_v55 }
 0x21a   :  { %v532_v60 = vand.u32 2147483647, %v2021_v56  ;;  %v585_v4 = vsub.f32 0.0, %v529_v53  ;;  %v587_v5 = vsub.f32 0.0, %v531_v54  ;;  %vm610_vm3 = vcmp.lt.f32.partialorder %v2018_v55, 0.0  ;;  %v856_v55 = vld [vmem:[#allocation7 + $0x70] sm:$0xff] }
 0x21b   :  { %v537_v61 = vadd.f32 1.0, %v533_v57  ;;  %v539_v62 = vadd.f32 1.0, %v535_v58  ;;  %v534_v63 = vmul.f32 0.3275911, %v530_v59  ;;  %v586_v7 = vsub.f32 0.0, %v530_v59 }
 0x21c   :  { %v536_v1 = vmul.f32 0.3275911, %v532_v60  ;;  %v589_v6 = vmul.f32 %v585_v4, %v529_v53  ;;  %v591_v8 = vmul.f32 %v587_v5, %v531_v54  ;;  %v588_v9 = vsub.f32 0.0, %v532_v60 }
 0x21d   :  { %1636 = vrcp.f32 %v537_v61  ;;  %v538_v2 = vadd.f32 1.0, %v534_v63  ;;  %v590_v14 = vmul.f32 %v586_v7, %v530_v59  ;;  %vm612_vm4 = vcmp.lt.f32.partialorder %v2021_v56, 0.0  ;;  %v855_v56 = vld [vmem:[#allocation7 + $0x68] sm:$0xff] }
 0x21e   :  { %1638 = vrcp.f32 %v539_v62  ;;  %v540_v3 = vadd.f32 1.0, %v536_v1  ;;  %v593_v13 = vmul.f32 1.442695, %v589_v6  ;;  %v597_v17 = vmul.f32 1.442695, %v591_v8 }
 0x21f   :  { %1640 = vrcp.f32 %v538_v2  ;;  %v592_v18 = vmul.f32 %v588_v9, %v532_v60  ;;  %v595_v24 = vmul.f32 1.442695, %v590_v14 }
 0x220   :  { %1642 = vrcp.f32 %v540_v3 }
 0x221   :  { %1644 = vpow2.f32 %v593_v13  ;;  %v599_v27 = vmul.f32 1.442695, %v592_v18 }
 0x222   :  { %1646 = vpow2.f32 %v597_v17 }
 0x223   :  { %1648 = vpow2.f32 %v595_v24 }
 0x224   :  { %1650 = vpow2.f32 %v599_v27 }
 0x22a   :  { %v1637_v10 = vpop.eup %1636 }
 0x22b   :  { %v1639_v11 = vpop.eup %1638  ;;  %v549_v12 = vmul.f32 1.0614054, %v1637_v10 }
 0x22c   :  { %v551_v16 = vmul.f32 1.0614054, %v1639_v11  ;;  %v1641_v20 = vpop.eup %1640 }
 0x22d   :  { %v553_v19 = vadd.f32 -1.4531521, %v549_v12  ;;  %v550_v23 = vmul.f32 1.0614054, %v1641_v20  ;;  %v1643_v25 = vpop.eup %1642 }
 0x22e   :  { %v555_v21 = vadd.f32 -1.4531521, %v551_v16  ;;  %v552_v30 = vmul.f32 1.0614054, %v1643_v25  ;;  %v1645_v61 = vpop.eup %1644 }
 0x22f   :  { %v557_v22 = vmul.f32 %v1637_v10, %v553_v19  ;;  %v554_v29 = vadd.f32 -1.4531521, %v550_v23  ;;  %v1647_v63 = vpop.eup %1646 }
 0x230   :  { %v559_v26 = vmul.f32 %v1639_v11, %v555_v21  ;;  %v556_v36 = vadd.f32 -1.4531521, %v552_v30  ;;  %v1649_v8 = vpop.eup %1648  ;;  %v857_v30 = vld [vmem:[#allocation7 + $0x78] sm:$0xff] }
 0x231   :  { %v561_v28 = vadd.f32 1.4214138, %v557_v22  ;;  %v558_v33 = vmul.f32 %v1641_v20, %v554_v29  ;;  %v1651_v16 = vpop.eup %1650 }
 0x232   :  { %v563_v31 = vadd.f32 1.4214138, %v559_v26  ;;  %v560_v40 = vmul.f32 %v1643_v25, %v556_v36  ;;  %v848_v36 = vld [vmem:[#allocation7 + $0x30] sm:$0xff] }
 0x233   :  { %v565_v32 = vmul.f32 %v1637_v10, %v561_v28  ;;  %v562_v15 = vadd.f32 1.4214138, %v558_v33  ;;  %v849_v33 = vld [vmem:[#allocation7 + $0x38] sm:$0xff] }
 0x234   :  { %v567_v37 = vmul.f32 %v1639_v11, %v563_v31  ;;  %v564_v44 = vadd.f32 1.4214138, %v560_v40  ;;  %v844_v40 = vld [vmem:[#allocation7 + $0x10] sm:$0xff] }
 0x235   :  { %v569_v39 = vadd.f32 -0.28449672, %v565_v32  ;;  %v566_v43 = vmul.f32 %v1641_v20, %v562_v15  ;;  %v850_v32 = vld [vmem:[#allocation7 + $0x40] sm:$0xff]  ;;  %v845_v15 = vld [vmem:[#allocation7 + $0x18] sm:$0xff] }
 0x236   :  { %v571_v41 = vadd.f32 -0.28449672, %v567_v37  ;;  %v568_v54 = vmul.f32 %v1643_v25, %v564_v44  ;;  %v847_v37 = vld [vmem:[#allocation7 + $0x28] sm:$0xff] }
 0x237   :  { %v573_v42 = vmul.f32 %v1637_v10, %v569_v39  ;;  %v570_v53 = vadd.f32 -0.28449672, %v566_v43  ;;  %v846_v39 = vld [vmem:[#allocation7 + $0x20] sm:$0xff]  ;;  %v1037_v43 = vld [vmem:[#allocation11 + $0xf8] sm:$0xff] }
 0x238   :  { %v575_v47 = vmul.f32 %v1639_v11, %v571_v41  ;;  %v572_v60 = vadd.f32 -0.28449672, %v568_v54  ;;  %v843_v41 = vld [vmem:[#allocation7 + $0x8] sm:$0xff] }
 0x239   :  { %v577_v48 = vadd.f32 0.2548296, %v573_v42  ;;  %v574_v59 = vmul.f32 %v1641_v20, %v570_v53  ;;  %v842_v42 = vld [vmem:[#allocation7] sm:$0xff] }
 0x23a   :  { %v579_v57 = vadd.f32 0.2548296, %v575_v47  ;;  %v576_v3 = vmul.f32 %v1643_v25, %v572_v60  ;;  %v1662_v60 = vld [vmem:[#allocation2] sm:$0x3] }
 0x23b   :  { %v581_v58 = vmul.f32 %v1637_v10, %v577_v48  ;;  %v578_v2 = vadd.f32 0.2548296, %v574_v59  ;;  %v1303_v59 = vld [vmem:[%s2097_s6] ss:$0 sm:$0xff] }
 0x23c   :  { %v583_v62 = vmul.f32 %v1639_v11, %v579_v57  ;;  %v580_v7 = vadd.f32 0.2548296, %v576_v3  ;;  %v1034_v3 = vld [vmem:[#allocation11 + $0xe0] sm:$0xff] }
 0x23d   :  { %v601_v1 = vmul.f32 %v1645_v61, %v581_v58  ;;  %v582_v6 = vmul.f32 %v1641_v20, %v578_v2 }
 0x23e   :  { %v603_v4 = vmul.f32 %v1647_v63, %v583_v62  ;;  %v584_v14 = vmul.f32 %v1643_v25, %v580_v7  ;;  %v1036_v63 = vld [vmem:[#allocation11 + $0xf0] sm:$0xff]  ;;  %v1030_v7 = vld [vmem:[#allocation11 + $0xc0] sm:$0xff] }
 0x23f   :  { %v605_v5 = vsub.f32 1.0, %v601_v1  ;;  %v602_v13 = vmul.f32 %v1649_v8, %v582_v6  ;;  %v1035_v1 = vld [vmem:[#allocation11 + $0xe8] sm:$0xff]  ;;  %v1029_v8 = vld [vmem:[#allocation11 + $0xb8] sm:$0xff] }
 0x240   :  { %v607_v9 = vsub.f32 1.0, %v603_v4  ;;  %v604_v18 = vmul.f32 %v1651_v16, %v584_v14  ;;  %v1033_v4 = vld [vmem:[#allocation11 + $0xd8] sm:$0xff]  ;;  %v1031_v6 = vld [vmem:[#allocation11 + $0xc8] sm:$0xff] }
 0x241   :  { %v613_v12 = vsub.f32 0.0, %v605_v5  ;;  %v606_v10 = vsub.f32 1.0, %v602_v13  ;;  %v1026_v13 = vld [vmem:[#allocation11 + $0xa0] sm:$0xff]  ;;  %v1025_v14 = vld [vmem:[#allocation11 + $0x98] sm:$0xff]  ;;  %v1023_v16 = vld [vmem:[#allocation11 + $0x88] sm:$0xff] }
 0x242   :  { %v615_v17 = vsub.f32 0.0, %v607_v9  ;;  %v608_v21 = vsub.f32 1.0, %v604_v18  ;;  %v1020_v18 = vld [vmem:[#allocation11 + $0x70] sm:$0xff] }
 0x243   :  { %v617_v11 = vsel %vm609_vm1, %v613_v12, %v605_v5  ;;  %v614_v19 = vsub.f32 0.0, %v606_v10  ;;  %v1032_v5 = vld [vmem:[#allocation11 + $0xd0] sm:$0xff]  ;;  %v1027_v12 = vld [vmem:[#allocation11 + $0xa8] sm:$0xff] }
 0x244   :  { %v619_v22 = vsel %vm611_vm2, %v615_v17, %v607_v9  ;;  %v621_v20 = vadd.f32 1.0, %v617_v11  ;;  %v616_v24 = vsub.f32 0.0, %v608_v21  ;;  %v1028_v9 = vld [vmem:[#allocation11 + $0xb0] sm:$0xff]  ;;  %v1022_v17 = vld [vmem:[#allocation11 + $0x80] sm:$0xff]  ;;  %v1019_v11 = vld [vmem:[#allocation11 + $0x68] sm:$0xff] }
 0x245   :  { %v618_v23 = vsel %vm610_vm3, %v614_v19, %v606_v10  ;;  %v623_v25 = vadd.f32 1.0, %v619_v22  ;;  %v1021_v10 = vld [vmem:[#allocation11 + $0x78] sm:$0xff]  ;;  %v1018_v19 = vld [vmem:[#allocation11 + $0x60] sm:$0xff]  ;;  %v1016_v22 = vld [vmem:[#allocation11 + $0x50] sm:$0xff] }
 0x246   :  { %v622_v26 = vadd.f32 1.0, %v618_v23  ;;  %v620_v27 = vsel %vm612_vm4, %v616_v24, %v608_v21  ;;  %v625_v29 = vmul.f32 %v621_v20, %v2001_v45  ;;  %v854_v45 = vld [vmem:[#allocation7 + $0x60] sm:$0xff]  ;;  %v1017_v21 = vld [vmem:[#allocation11 + $0x58] sm:$0xff]  ;;  %v1015_v20 = vld [vmem:[#allocation11 + $0x48] sm:$0xff] }
 0x247   :  { %v624_v28 = vadd.f32 1.0, %v620_v27  ;;  %v627_v31 = vmul.f32 %v623_v25, %v2003_v46  ;;  %v853_v46 = vld [vmem:[#allocation7 + $0x58] sm:$0xff]  ;;  %v1014_v23 = vld [vmem:[#allocation11 + $0x40] sm:$0xff]  ;;  %v1011_v25 = vld [vmem:[#allocation11 + $0x28] sm:$0xff] }
 0x248   :  { %v626_v49 = vmul.f32 %v622_v26, %v2011_v51  ;;  %v852_v51 = vld [vmem:[#allocation7 + $0x50] sm:$0xff]  ;;  %v1013_v24 = vld [vmem:[#allocation11 + $0x38] sm:$0xff]  ;;  %v1010_v27 = vld [vmem:[#allocation11 + $0x20] sm:$0xff] }
 0x249   :  { %v628_v50 = vmul.f32 %v624_v28, %v2013_v52  ;;  %v851_v52 = vld [vmem:[#allocation7 + $0x48] sm:$0xff]  ;;  %v1012_v26 = vld [vmem:[#allocation11 + $0x30] sm:$0xff] }
 0x24a   :  { %757 = vmatprep.mubr.f32.mxu0 %v626_v49  ;;  %v1009_v49 = vld [vmem:[#allocation11 + $0x18] sm:$0xff]  ;;  %v1008_v28 = vld [vmem:[#allocation11 + $0x10] sm:$0xff] }
 0x24b   :  { %758 = vmatmul.mubr.f32.vlgmr.msra.gmra.mxu0 %v625_v29  ;;  %827 = vmatprep.mubr.f32.mxu1 %v628_v50  ;;  %v1007_v29 = vld [vmem:[#allocation11 + $0x8] sm:$0xff] }
 0x24c   :  { %1549 = vmatpush3.msra.mxu0 %v857_v30  ;;  %828 = vmatmul.mubr.f32.vlgmr.msra.gmra.mxu1 %v627_v31 }
 0x24d   :  { %1550 = vmatprep.subr.mxu0 %v1846_v0  ;;  %1584 = vmatpush3.msra.mxu1 %v857_v30  ;;  %v1006_v30 = vld [vmem:[#allocation11] sm:$0xff] }
 0x24e   :  { %1551 = vmatpush3.msra.mxu0 %v856_v55  ;;  %1585 = vmatprep.subr.mxu1 %v1846_v0 }
 0x24f   :  { %1552 = vmatprep.subr.mxu0 %v1846_v0  ;;  %1586 = vmatpush3.msra.mxu1 %v856_v55 }
 0x250   :  { %1553 = vmatpush3.msra.mxu0 %v855_v56  ;;  %1587 = vmatprep.subr.mxu1 %v1846_v0 }
 0x251   :  { %1554 = vmatprep.subr.mxu0 %v1846_v0  ;;  %1588 = vmatpush3.msra.mxu1 %v855_v56 }
 0x252   :  { %1555 = vmatpush3.msra.mxu0 %v854_v45  ;;  %1589 = vmatprep.subr.mxu1 %v1846_v0 }
 0x253   :  { %1556 = vmatprep.subr.mxu0 %v1846_v0  ;;  %1590 = vmatpush3.msra.mxu1 %v854_v45 }
 0x254   :  { %1557 = vmatpush3.msra.mxu0 %v853_v46  ;;  %1591 = vmatprep.subr.mxu1 %v1846_v0 }
 0x255   :  { %1558 = vmatprep.subr.mxu0 %v1846_v0  ;;  %1592 = vmatpush3.msra.mxu1 %v853_v46 }
 0x256   :  { %1559 = vmatpush3.msra.mxu0 %v852_v51  ;;  %1593 = vmatprep.subr.mxu1 %v1846_v0 }
 0x257   :  { %1560 = vmatprep.subr.mxu0 %v1846_v0  ;;  %1594 = vmatpush3.msra.mxu1 %v852_v51 }
 0x258   :  { %1561 = vmatpush3.msra.mxu0 %v851_v52  ;;  %1595 = vmatprep.subr.mxu1 %v1846_v0 }
 0x259   :  { %1562 = vmatprep.subr.mxu0 %v1846_v0  ;;  %1596 = vmatpush3.msra.mxu1 %v851_v52 }
 0x25a   :  { %1563 = vmatpush3.msra.mxu0 %v850_v32  ;;  %1597 = vmatprep.subr.mxu1 %v1846_v0 }
 0x25b   :  { %1564 = vmatprep.subr.mxu0 %v1846_v0  ;;  %1598 = vmatpush3.msra.mxu1 %v850_v32 }
 0x25c   :  { %1565 = vmatpush3.msra.mxu0 %v849_v33  ;;  %1599 = vmatprep.subr.mxu1 %v1846_v0 }
 0x25d   :  { %1566 = vmatprep.subr.mxu0 %v1846_v0  ;;  %1600 = vmatpush3.msra.mxu1 %v849_v33 }
 0x25e   :  { %1567 = vmatpush3.msra.mxu0 %v848_v36  ;;  %1601 = vmatprep.subr.mxu1 %v1846_v0 }
 0x25f   :  { %1568 = vmatprep.subr.mxu0 %v1846_v0  ;;  %1602 = vmatpush3.msra.mxu1 %v848_v36 }
 0x260   :  { %1580 = vmatprep.mubr.msk.f32.mxu0 %vm1847_vm0, %v1846_v0  ;;  %1603 = vmatprep.subr.mxu1 %v1846_v0 }
 0x261   :  { %1615 = vmatprep.mubr.msk.f32.mxu1 %vm1847_vm0, %v1846_v0  ;;  %1569 = vmatpush3.msra.mxu0 %v847_v37 }
 0x262   :  { %1604 = vmatpush3.msra.mxu1 %v847_v37  ;;  %1570 = vmatprep.subr.mxu0 %v1846_v0  ;;  %v1204_v37 = vld [vmem:[#allocation13 + $0xf8] sm:$0xff] }
 0x263   :  { %1605 = vmatprep.subr.mxu1 %v1846_v0  ;;  %1571 = vmatpush3.msra.mxu0 %v846_v39 }
 0x264   :  { %1606 = vmatpush3.msra.mxu1 %v846_v39  ;;  %1572 = vmatprep.subr.mxu0 %v1846_v0  ;;  %v1188_v39 = vld [vmem:[#allocation13 + $0x78] sm:$0xff] }
 0x265   :  { %1607 = vmatprep.subr.mxu1 %v1846_v0  ;;  %1573 = vmatpush3.msra.mxu0 %v845_v15 }
 0x266   :  { %1608 = vmatpush3.msra.mxu1 %v845_v15  ;;  %1574 = vmatprep.subr.mxu0 %v1846_v0  ;;  %v1203_v15 = vld [vmem:[#allocation13 + $0xf0] sm:$0xff] }
 0x267   :  { %1609 = vmatprep.subr.mxu1 %v1846_v0  ;;  %1575 = vmatpush3.msra.mxu0 %v844_v40 }
 0x268   :  { %1610 = vmatpush3.msra.mxu1 %v844_v40  ;;  %1576 = vmatprep.subr.mxu0 %v1846_v0  ;;  %v1187_v40 = vld [vmem:[#allocation13 + $0x70] sm:$0xff] }
 0x269   :  { %1611 = vmatprep.subr.mxu1 %v1846_v0  ;;  %1577 = vmatpush3.msra.mxu0 %v843_v41 }
 0x26a   :  { %1612 = vmatpush3.msra.mxu1 %v843_v41  ;;  %1578 = vmatprep.subr.mxu0 %v1846_v0  ;;  %v1202_v41 = vld [vmem:[#allocation13 + $0xe8] sm:$0xff] }
 0x26b   :  { %1613 = vmatprep.subr.mxu1 %v1846_v0  ;;  %1579 = vmatpush3.msra.mxu0 %v842_v42 }
 0x26c   :  { %1614 = vmatpush3.msra.mxu1 %v842_v42  ;;  %1050 = vmatprep.subr.mxu0 %v1037_v43  ;;  %v1186_v42 = vld [vmem:[#allocation13 + $0x68] sm:$0xff]  ;;  %v1201_v43 = vld [vmem:[#allocation13 + $0xe0] sm:$0xff] }
 0x26d   :  { %1443 = vmatprep.subr.mxu1 %v1204_v37 }
 0x30b   :  { %v1371_v44 = vpop.f32.mrf.mxu0 }
 0x30c   :  { %v1406_v47 = vpop.f32.mrf.mxu1 }
 0x30d   :  { %v1372_v48 = vpop.f32.mrf.mxu0 }
 0x30e   :  { %v1373_v53 = vadd.f32 %v1372_v48, %v1371_v44  ;;  %v1407_v54 = vpop.f32.mrf.mxu1  ;;  %v1185_v44 = vld [vmem:[#allocation13 + $0x60] sm:$0xff]  ;;  %v1184_v48 = vld [vmem:[#allocation13 + $0x58] sm:$0xff] }
 0x30f   :  { %v1408_v57 = vadd.f32 %v1407_v54, %v1406_v47  ;;  %v1200_v47 = vld [vmem:[#allocation13 + $0xd8] sm:$0xff]  ;;  %v1183_v54 = vld [vmem:[#allocation13 + $0x50] sm:$0xff] }
 0x311   :  { %v830_v58 = vadd.f32 %v1408_v57, %v1373_v53  ;;  %v1199_v53 = vld [vmem:[#allocation13 + $0xd0] sm:$0xff]  ;;  %v1198_v57 = vld [vmem:[#allocation13 + $0xc8] sm:$0xff] }
 0x313   :  { %v833_v61 = vadd.f32 %v1662_v60, %v830_v58  ;;  %v1182_v58 = vld [vmem:[#allocation13 + $0x48] sm:$0xff]  ;;  %v1181_v60 = vld [vmem:[#allocation13 + $0x40] sm:$0xff] }
 0x315   :  { %v2070_v62 = vadd.f32 %v1303_v59, %v833_v61  ;;  %v1197_v59 = vld [vmem:[#allocation13 + $0xc0] sm:$0xff]  ;;  %v1196_v61 = vld [vmem:[#allocation13 + $0xb8] sm:$0xff] }
 0x317   :  { %1581 = vmatmul.mubr.f32.vlgmr.msra.gmra.mxu0 %v2070_v62  ;;  %v928_v2 = vmul.f32 %v2070_v62, %v2070_v62 }
 0x318   :  { %1051 = vmatpush1.msra.mxu0 %v1036_v63  ;;  %1114 = vmatprep.mubr.f32.mxu0 %v1846_v0  ;;  %v1024_v0 = vld [vmem:[#allocation11 + $0x90] sm:$0xff]  ;;  %v1180_v63 = vld [vmem:[#allocation13 + $0x38] sm:$0xff] }
 0x319   :  { %1616 = vmatmul.mubr.f32.vlgmr.msra.gmra.mxu1 %v928_v2  ;;  %1052 = vmatprep.subr.mxu0 %v1035_v1  ;;  %v1195_v1 = vld [vmem:[#allocation13 + $0xb0] sm:$0xff] }
 0x31a   :  { %1053 = vmatpush1.msra.mxu0 %v1034_v3  ;;  %1444 = vmatpush3.msra.mxu1 %v1188_v39  ;;  %v1179_v2 = vld [vmem:[#allocation13 + $0x30] sm:$0xff]  ;;  %v1194_v3 = vld [vmem:[#allocation13 + $0xa8] sm:$0xff] }
 0x31b   :  { %1054 = vmatprep.subr.mxu0 %v1033_v4  ;;  %1445 = vmatprep.subr.mxu1 %v1203_v15  ;;  %v1178_v4 = vld [vmem:[#allocation13 + $0x28] sm:$0xff] }
 0x31c   :  { %1055 = vmatpush1.msra.mxu0 %v1032_v5  ;;  %1446 = vmatpush3.msra.mxu1 %v1187_v40  ;;  %v1193_v5 = vld [vmem:[#allocation13 + $0xa0] sm:$0xff] }
 0x31d   :  { %1056 = vmatprep.subr.mxu0 %v1031_v6  ;;  %1447 = vmatprep.subr.mxu1 %v1202_v41  ;;  %v1177_v6 = vld [vmem:[#allocation13 + $0x20] sm:$0xff] }
 0x31e   :  { %1057 = vmatpush1.msra.mxu0 %v1030_v7  ;;  %1448 = vmatpush3.msra.mxu1 %v1186_v42  ;;  %v1192_v7 = vld [vmem:[#allocation13 + $0x98] sm:$0xff] }
 0x31f   :  { %1058 = vmatprep.subr.mxu0 %v1029_v8  ;;  %1449 = vmatprep.subr.mxu1 %v1201_v43  ;;  %v1176_v8 = vld [vmem:[#allocation13 + $0x18] sm:$0xff] }
 0x320   :  { %1059 = vmatpush1.msra.mxu0 %v1028_v9  ;;  %1450 = vmatpush3.msra.mxu1 %v1185_v44  ;;  %v1191_v9 = vld [vmem:[#allocation13 + $0x90] sm:$0xff] }
 0x321   :  { %1060 = vmatprep.subr.mxu0 %v1027_v12  ;;  %1451 = vmatprep.subr.mxu1 %v1200_v47  ;;  %v1175_v12 = vld [vmem:[#allocation13 + $0x10] sm:$0xff] }
 0x322   :  { %1061 = vmatpush1.msra.mxu0 %v1026_v13  ;;  %1452 = vmatpush3.msra.mxu1 %v1184_v48  ;;  %v1190_v13 = vld [vmem:[#allocation13 + $0x88] sm:$0xff] }
 0x323   :  { %1062 = vmatprep.subr.mxu0 %v1025_v14  ;;  %1453 = vmatprep.subr.mxu1 %v1199_v53  ;;  %v1174_v14 = vld [vmem:[#allocation13 + $0x8] sm:$0xff] }
 0x324   :  { %1063 = vmatpush1.msra.mxu0 %v1024_v0  ;;  %1454 = vmatpush3.msra.mxu1 %v1183_v54  ;;  %v1189_v0 = vld [vmem:[#allocation13 + $0x80] sm:$0xff] }
 0x325   :  { %1064 = vmatprep.subr.mxu0 %v1023_v16  ;;  %1455 = vmatprep.subr.mxu1 %v1198_v57  ;;  %v1173_v16 = vld [vmem:[#allocation13] sm:$0xff] }
 0x326   :  { %1065 = vmatpush1.msra.mxu0 %v1022_v17  ;;  %1456 = vmatpush3.msra.mxu1 %v1182_v58  ;;  %v1038_v17 = vld [vmem:[%s2099_s8] sm:$0x3] }
 0x327   :  { %1066 = vmatprep.subr.mxu0 %v1021_v10  ;;  %1457 = vmatprep.subr.mxu1 %v1197_v59  ;;  %v1043_v10 = vrot.slane %v1038_v17, %v365_v35 }
 0x328   :  { %1067 = vmatpush1.msra.mxu0 %v1020_v18  ;;  %1458 = vmatpush3.msra.mxu1 %v1181_v60  ;;  %v1047_v18 = vrot.slane %v1038_v17, %v369_v38 }
 0x329   :  { %1068 = vmatprep.subr.mxu0 %v1019_v11  ;;  %1459 = vmatprep.subr.mxu1 %v1196_v61 }
 0x32a   :  { %1069 = vmatpush1.msra.mxu0 %v1018_v19  ;;  %1460 = vmatpush3.msra.mxu1 %v1180_v63 }
 0x32b   :  { %1070 = vmatprep.subr.mxu0 %v1017_v21  ;;  %1461 = vmatprep.subr.mxu1 %v1195_v1 }
 0x32c   :  { %1071 = vmatpush1.msra.mxu0 %v1016_v22  ;;  %1462 = vmatpush3.msra.mxu1 %v1179_v2 }
 0x32d   :  { %1072 = vmatprep.subr.mxu0 %v1015_v20  ;;  %1463 = vmatprep.subr.mxu1 %v1194_v3 }
 0x32e   :  { %1073 = vmatpush1.msra.mxu0 %v1014_v23  ;;  %1464 = vmatpush3.msra.mxu1 %v1178_v4 }
 0x32f   :  { %1074 = vmatprep.subr.mxu0 %v1013_v24  ;;  %1465 = vmatprep.subr.mxu1 %v1193_v5 }
 0x330   :  { %1075 = vmatpush1.msra.mxu0 %v1012_v26  ;;  %1466 = vmatpush3.msra.mxu1 %v1177_v6 }
 0x331   :  { %1076 = vmatprep.subr.mxu0 %v1011_v25  ;;  %1467 = vmatprep.subr.mxu1 %v1192_v7 }
 0x332   :  { %1077 = vmatpush1.msra.mxu0 %v1010_v27  ;;  %1468 = vmatpush3.msra.mxu1 %v1176_v8 }
 0x333   :  { %1078 = vmatprep.subr.mxu0 %v1009_v49  ;;  %1469 = vmatprep.subr.mxu1 %v1191_v9 }
 0x334   :  { %1079 = vmatpush1.msra.mxu0 %v1008_v28  ;;  %1470 = vmatpush3.msra.mxu1 %v1175_v12  ;;  %v1304_v12 = vld [vmem:[%s2101_s10] ss:$0 sm:$0xff] }
 0x335   :  { %1080 = vmatprep.subr.mxu0 %v1007_v29  ;;  %1471 = vmatprep.subr.mxu1 %v1190_v13 }
 0x336   :  { %1081 = vmatpush1.msra.mxu0 %v1006_v30  ;;  %1472 = vmatpush3.msra.mxu1 %v1174_v14 }
 0x337   :  { %1473 = vmatprep.subr.mxu1 %v1189_v0 }
 0x338   :  { %1474 = vmatpush3.msra.mxu1 %v1173_v16 }
 0x3d7   :  { %v924_v50 = vpop.f32.mrf.mxu0 }
 0x3d8   :  { %v999_v31 = vmul.f32 %v924_v50, %v924_v50  ;;  %v1002_v32 = vsub.f32 %v2070_v62, %v924_v50 }
 0x3d9   :  { %v1582_v55 = vpop.f32.mrf.mxu0  ;;  %v995_v56 = vpop.f32.mrf.mxu1 }
 0x3da   :  { %v1000_v45 = vsub.f32 %v995_v56, %v999_v31 }
 0x3db   :  { %v1617_v46 = vpop.f32.mrf.mxu1 }
 0x3dc   :  { %v1001_v51 = vmax.f32 %v1000_v45, 0.0 }
 0x3de   :  { %v1003_v52 = vadd.f32 1e-05, %v1001_v51 }
 0x3e0   :  { %1652 = vrsqrt.f32 %v1003_v52 }
 0x3ed   :  { %v1653_v33 = vpop.eup %1652 }
 0x3ee   :  { %v1005_v36 = vmul.f32 %v1653_v33, %v1002_v32 }
 0x3f0   :  { %1115 = vmatmul.mubr.f32.vlgmr.msra.gmra.mxu0 %v1005_v36 }
 0x4b0   :  { %v1116_v11 = vpop.f32.mrf.mxu0 }
 0x4b1   :  { %v1117_v19 = vadd.f32 %v1116_v11, %v1043_v10 }
 0x4b2   :  { %v1118_v21 = vpop.f32.mrf.mxu0 }
 0x4b3   :  { %v1121_v22 = vmul.f32 0.70710677, %v1117_v19  ;;  %v1119_v20 = vadd.f32 %v1118_v21, %v1047_v18 }
 0x4b5   :  { %v1123_v23 = vand.u32 2147483647, %v1121_v22  ;;  %v1122_v24 = vmul.f32 0.70710677, %v1119_v20  ;;  %vm1163_vm5 = vcmp.lt.f32.partialorder %v1121_v22, 0.0 }
 0x4b7   :  { %v1125_v26 = vmul.f32 0.3275911, %v1123_v23  ;;  %v1124_v25 = vand.u32 2147483647, %v1122_v24  ;;  %v1151_v29 = vsub.f32 0.0, %v1123_v23  ;;  %vm1164_vm6 = vcmp.lt.f32.partialorder %v1122_v24, 0.0 }
 0x4b9   :  { %v1127_v27 = vadd.f32 1.0, %v1125_v26  ;;  %v1126_v49 = vmul.f32 0.3275911, %v1124_v25  ;;  %v1152_v30 = vsub.f32 0.0, %v1124_v25  ;;  %v1153_v35 = vmul.f32 %v1151_v29, %v1123_v23 }
 0x4bb   :  { %1654 = vrcp.f32 %v1127_v27  ;;  %v1128_v28 = vadd.f32 1.0, %v1126_v49  ;;  %v1154_v34 = vmul.f32 %v1152_v30, %v1124_v25  ;;  %v1155_v31 = vmul.f32 1.442695, %v1153_v35 }
 0x4bd   :  { %1656 = vrcp.f32 %v1128_v28  ;;  %v1157_v46 = vmul.f32 1.442695, %v1154_v34 }
 0x4be   :  { %1658 = vpow2.f32 %v1155_v31 }
 0x4bf   :  { %1660 = vpow2.f32 %v1157_v46 }
 0x4c8   :  { %v1655_v50 = vpop.eup %1654 }
 0x4c9   :  { %v1133_v38 = vmul.f32 1.0614054, %v1655_v50 }
 0x4ca   :  { %v1657_v55 = vpop.eup %1656 }
 0x4cb   :  { %v1135_v56 = vadd.f32 -1.4531521, %v1133_v38  ;;  %v1134_v45 = vmul.f32 1.0614054, %v1657_v55  ;;  %v1659_v47 = vpop.eup %1658 }
 0x4cc   :  { %v1661_v57 = vpop.eup %1660 }
 0x4cd   :  { %v1137_v51 = vmul.f32 %v1655_v50, %v1135_v56  ;;  %v1136_v52 = vadd.f32 -1.4531521, %v1134_v45 }
 0x4cf   :  { %v1139_v32 = vadd.f32 1.4214138, %v1137_v51  ;;  %v1138_v33 = vmul.f32 %v1657_v55, %v1136_v52 }
 0x4d1   :  { %v1141_v36 = vmul.f32 %v1655_v50, %v1139_v32  ;;  %v1140_v37 = vadd.f32 1.4214138, %v1138_v33 }
 0x4d3   :  { %v1143_v39 = vadd.f32 -0.28449672, %v1141_v36  ;;  %v1142_v15 = vmul.f32 %v1657_v55, %v1140_v37 }
 0x4d5   :  { %v1145_v40 = vmul.f32 %v1655_v50, %v1143_v39  ;;  %v1144_v41 = vadd.f32 -0.28449672, %v1142_v15 }
 0x4d7   :  { %v1147_v42 = vadd.f32 0.2548296, %v1145_v40  ;;  %v1146_v43 = vmul.f32 %v1657_v55, %v1144_v41 }
 0x4d9   :  { %v1149_v44 = vmul.f32 %v1655_v50, %v1147_v42  ;;  %v1148_v48 = vadd.f32 0.2548296, %v1146_v43 }
 0x4db   :  { %v1159_v53 = vmul.f32 %v1659_v47, %v1149_v44  ;;  %v1150_v54 = vmul.f32 %v1657_v55, %v1148_v48 }
 0x4dd   :  { %v1161_v58 = vsub.f32 1.0, %v1159_v53  ;;  %v1160_v59 = vmul.f32 %v1661_v57, %v1150_v54 }
 0x4df   :  { %v1165_v60 = vsub.f32 0.0, %v1161_v58  ;;  %v1162_v61 = vsub.f32 1.0, %v1160_v59 }
 0x4e1   :  { %v1167_v63 = vsel %vm1163_vm5, %v1165_v60, %v1161_v58  ;;  %v1166_v1 = vsub.f32 0.0, %v1162_v61 }
 0x4e2   :  { %v1169_v2 = vadd.f32 1.0, %v1167_v63 }
 0x4e3   :  { %v1168_v3 = vsel %vm1164_vm6, %v1166_v1, %v1162_v61 }
 0x4e4   :  { %v1170_v4 = vadd.f32 1.0, %v1168_v3  ;;  %v1171_v6 = vmul.f32 %v1169_v2, %v1117_v19 }
 0x4e6   :  { %v1172_v5 = vmul.f32 %v1170_v4, %v1119_v20 }
 0x4e8   :  { %1269 = vmatprep.mubr.f32.mxu1 %v1172_v5 }
 0x4e9   :  { %1270 = vmatmul.mubr.f32.vlgmr.msra.gmra.mxu1 %v1171_v6 }
 0x5a9   :  { %v1475_v7 = vpop.f32.mrf.mxu1 }
 0x5ab   :  { %v1476_v8 = vpop.f32.mrf.mxu1 }
 0x5ac   :  { %v1477_v9 = vadd.f32 %v1476_v8, %v1475_v7 }
 0x5ae   :  { %v1275_v13 = vadd.f32 %v1477_v9, %v2070_v62 }
 0x5b0   :  { %v1283_v14 = vadd.f32 %v1304_v12, %v1275_v13 }
 0x5b2   :  { %1284 = vst [vmem:[#allocation14] sm:$0x3] %v1283_v14 }
 0x5b3   :  { %1814 = shalt.err (!%p1811_p11)
}
 0x5b4   :  { %1294 = dma.vmem_to_hbm [thread:$0]  %s1292_s18, 32, %s2102_s11, [#allocation4]  }
 0x5b5   :  { %1831 = dma.done.wait [#allocation4], 32  }
 0x5b6   :  { %1832 = vsyncadd [#allocation4], 4294967264 }
 0x5b7   :  { %1298 = vsyncpa [#allocation3], 1 }
 0x5b8   :  { %1299 = vsyncpa [#allocation6], 1 }
 0x5b9   :  { %1300 = vsyncpa [#allocation9], 1 }
 0x5ba   :  { %1301 = vsyncpa [#allocation12], 1 }
 0x5bb   :  { %1302 = vsyncpa [#allocation4], 1 }

</bundles_post_ra>
